<compile_context>
chip_gen: v5e
topology: v5e:2x2
jax: 0.10.0
libtpu: 0.0.40
codegen_flags: <defaults>
</compile_context>

<pallas_src>
import jax
import jax.numpy as jnp
from jax import lax
from jax.experimental import pallas as pl
from jax.experimental.pallas import tpu as pltpu


def _make_kernel(T, n_tile, cell, action, head_w, mm_dtype, unroll):
  """Builds the per-batch-tile kernel (dims captured by closure)."""
  C = cell
  A = action

  def kernel(x_ref, notdone_ref, h0_ref, c0_ref,
             w_enc_ref, b_enc_ref, w_ih_ref, w_hh_ref, b_lstm_ref,
             w_head_ref, b_head_ref,
             head_ref, h_out_ref, c_out_ref,
             gx_ref, h_hist_ref):
    # ---- Phase 1: time-independent work for all steps of this batch tile ---
    # encoder Linear + ReLU and the LSTM input projection (+ bias), hoisted
    # off the serial recurrence into the 3-D gx scratch.
    w_enc = w_enc_ref[...].astype(mm_dtype)
    b_enc = b_enc_ref[...]
    w_ih = w_ih_ref[...].astype(mm_dtype)
    b_lstm = b_lstm_ref[...]

    def phase1(t, carry):
      x_t = x_ref[t].astype(mm_dtype)                            # (NT, D_in)
      enc = jnp.maximum(
          jnp.dot(x_t, w_enc, preferred_element_type=jnp.float32) + b_enc,
          0.0)                                                   # (NT, dense)
      gx_ref[t] = (jnp.dot(enc.astype(mm_dtype), w_ih,
                           preferred_element_type=jnp.float32) + b_lstm)
      return carry

    lax.fori_loop(0, T, phase1, 0, unroll=unroll)

    # ---- Phase 2: serial masked-LSTM recurrence (h, c carried in vregs) ----
    w_hh = w_hh_ref[...]                                         # f32: serial path
    # Hoisted per-lane constants for the single-tanh gate trick:
    #   sigmoid(x) = 0.5*tanh(0.5*x) + 0.5  (i, f, o lanes),  tanh(x) (g lanes)
    lane4c = lax.broadcasted_iota(jnp.int32, (1, 4 * C), 1)
    is_g = jnp.logical_and(lane4c >= 2 * C, lane4c < 3 * C)
    g_scale = jnp.where(is_g, 1.0, 0.5).astype(jnp.float32)      # (1, 4C)
    g_shift = jnp.where(is_g, 0.0, 0.5).astype(jnp.float32)      # (1, 4C)

    def step(t, carry):
      h, c = carry
      nd = notdone_ref[t]                                        # (NT, 1)
      h = h * nd
      c = c * nd
      gates = gx_ref[t] + jnp.dot(h, w_hh,
                                  preferred_element_type=jnp.float32)  # (NT,4C)
      act = jnp.tanh(gates * g_scale) * g_scale + g_shift        # 1 EUP push
      gi = act[:, 0 * C:1 * C]
      gf = act[:, 1 * C:2 * C]
      gg = act[:, 2 * C:3 * C]
      go = act[:, 3 * C:4 * C]
      c_new = gf * c + gi * gg
      h_new = go * jnp.tanh(c_new)
      h_hist_ref[t] = h_new                                      # only store/step
      return (h_new, c_new)

    h_fin, c_fin = lax.fori_loop(0, T, step, (h0_ref[...], c0_ref[...]),
                                 unroll=unroll)
    h_out_ref[...] = h_fin                                       # written once
    c_out_ref[...] = c_fin

    # ---- Phase 3: deferred fused policy + value head, lane-dense stores ----
    w_head = w_head_ref[...].astype(mm_dtype)                    # (C, head_w)
    b_head = b_head_ref[...]                                     # (1, head_w)
    lane = lax.broadcasted_iota(jnp.int32, (n_tile, head_w), 1)
    is_logit = lane < A
    is_value = lane == A
    neg_big = jnp.float32(-1e30)

    def head_step(t, carry):
      h_t = h_hist_ref[t].astype(mm_dtype)                       # (NT, C)
      hd = (jnp.dot(h_t, w_head, preferred_element_type=jnp.float32)
            + b_head)                                            # (NT, head_w)
      logits = jnp.where(is_logit, hd, neg_big)
      m = jnp.max(logits, axis=-1, keepdims=True)
      e = jnp.where(is_logit, jnp.exp(logits - m), 0.0)
      denom = jnp.sum(e, axis=-1, keepdims=True)
      pol = e / denom                                            # exact norm
      head_ref[t] = jnp.where(is_logit, pol,
                              jnp.where(is_value, hd, 0.0))      # unmasked vst
      return carry

    lax.fori_loop(0, T, head_step, 0, unroll=unroll)

  return kernel


def _pick_batch_tile(n):
  """Largest multiple-of-8 divisor of n (capped at 128); n itself otherwise."""
  if n % 8 != 0:
    return n
  for cand in range(min(n, 128), 0, -8):
    if n % cand == 0:
      return cand
  return n


def _vmem_bytes(shape, itemsize=4):
  s = list(shape)
  s[-1] = ((s[-1] + 127) // 128) * 128
  if len(s) >= 2:
    s[-2] = ((s[-2] + 7) // 8) * 8
  n = 1
  for d in s:
    n *= d
  return n * itemsize


def actor_critic_forward(state, done, hidden, params, *,
                         matmul_dtype=jnp.float32):
  """state: (T, N, D_in) f32; done: (T, N, 1) f32; hidden: (h, c) each (N, C).

  Set matmul_dtype=jnp.bfloat16 on v6e/v7x for higher MXU throughput
  (f32 accumulation is kept; the serial h@W_hh stays f32).
  """
  T, N, D_in = state.shape
  h0, c0 = hidden
  C = h0.shape[-1]
  A = params["w_pi"].shape[-1]
  dense = params["w_enc"].shape[-1]
  head_w = pl.cdiv(A + 1, 128) * 128        # lane-dense fused head width

  # Fuse policy + value heads and zero-pad to a full lane tile host-side.
  w_head = jnp.zeros((C, head_w), jnp.float32)
  w_head = w_head.at[:, :A].set(params["w_pi"]).at[:, A:A + 1].set(params["w_v"])
  b_head = jnp.zeros((1, head_w), jnp.float32)
  b_head = b_head.at[:, :A].set(params["b_pi"]).at[:, A:A + 1].set(params["b_v"])

  notdone = (1.0 - done).astype(jnp.float32)  # pre-inverted mask, (T, N, 1)

  n_tile = _pick_batch_tile(N)
  nb = N // n_tile if N % n_tile == 0 else 1
  unroll = max(1, min(T, 8))                  # bounded unroll of the recurrence

  kernel = _make_kernel(T, n_tile, C, A, head_w, matmul_dtype, unroll)

  in_specs = [
      pl.BlockSpec((T, n_tile, D_in), lambda b: (0, b, 0)),   # state
      pl.BlockSpec((T, n_tile, 1), lambda b: (0, b, 0)),      # notdone
      pl.BlockSpec((n_tile, C), lambda b: (b, 0)),            # h0
      pl.BlockSpec((n_tile, C), lambda b: (b, 0)),            # c0
      pl.BlockSpec((D_in, dense), lambda b: (0, 0)),          # w_enc
      pl.BlockSpec((1, dense), lambda b: (0, 0)),             # b_enc
      pl.BlockSpec((dense, 4 * C), lambda b: (0, 0)),         # w_ih
      pl.BlockSpec((C, 4 * C), lambda b: (0, 0)),             # w_hh
      pl.BlockSpec((1, 4 * C), lambda b: (0, 0)),             # b_lstm
      pl.BlockSpec((C, head_w), lambda b: (0, 0)),            # fused head W
      pl.BlockSpec((1, head_w), lambda b: (0, 0)),            # fused head b
  ]
  out_specs = (
      pl.BlockSpec((T, n_tile, head_w), lambda b: (0, b, 0)),  # policy|value
      pl.BlockSpec((n_tile, C), lambda b: (b, 0)),             # final h
      pl.BlockSpec((n_tile, C), lambda b: (b, 0)),             # final c
  )
  out_shape = (
      jax.ShapeDtypeStruct((T, N, head_w), jnp.float32),
      jax.ShapeDtypeStruct((N, C), jnp.float32),
      jax.ShapeDtypeStruct((N, C), jnp.float32),
  )
  scratch_shapes = [
      pltpu.VMEM((T, n_tile, 4 * C), jnp.float32),   # precomputed x-gates
      pltpu.VMEM((T, n_tile, C), jnp.float32),       # per-step h history
  ]

  # VMEM budget from actual per-tile residency (double-buffered I/O blocks).
  resident = (
      2 * _vmem_bytes((T, n_tile, D_in)) +
      2 * _vmem_bytes((T, n_tile, 1)) +
      4 * _vmem_bytes((n_tile, C)) +                 # h0, c0 (x2 buffers)
      2 * (_vmem_bytes((D_in, dense)) + _vmem_bytes((1, dense)) +
           _vmem_bytes((dense, 4 * C)) + _vmem_bytes((C, 4 * C)) +
           _vmem_bytes((1, 4 * C)) + _vmem_bytes((C, head_w)) +
           _vmem_bytes((1, head_w))) +
      2 * _vmem_bytes((T, n_tile, head_w)) +
      4 * _vmem_bytes((n_tile, C)) +                 # h_out, c_out (x2 buffers)
      _vmem_bytes((T, n_tile, 4 * C)) + _vmem_bytes((T, n_tile, C)))
  vmem_limit = int(min(max(2 * resident + (8 << 20), 32 << 20), 64 << 20))

  head, h_n, c_n = pl.pallas_call(
      kernel,
      grid=(nb,),
      in_specs=in_specs,
      out_specs=out_specs,
      out_shape=out_shape,
      scratch_shapes=scratch_shapes,
      compiler_params=pltpu.CompilerParams(
          dimension_semantics=("parallel",),        # megacore over batch tiles
          vmem_limit_bytes=vmem_limit),
  )(state, notdone, h0, c0,
    params["w_enc"], params["b_enc"],
    params["w_ih"], params["w_hh"], params["b_lstm"],
    w_head, b_head)

  # Match the PyTorch forward's views (host-side slicing of the padded head).
  head2 = head.reshape(T * N, head_w)
  policy = head2[:, :A]                 # (T*N, action_size)
  value = head2[:, A]                   # .view(-1) -> (T*N,)
  hidden_out = (h_n[None], c_n[None])   # (1, N, cell) each
  return policy, value, hidden_out


def reference_forward(state, done, hidden, params):
  """Pure-JAX reference of the same semantics (for a correctness check)."""
  h, c = hidden
  C = h.shape[-1]

  def step(carry, inp):
    h, c = carry
    x, d = inp
    mask = 1.0 - d
    h = h * mask
    c = c * mask
    enc = jnp.maximum(x @ params["w_enc"] + params["b_enc"], 0.0)
    gates = (enc @ params["w_ih"] + params["b_lstm"]) + h @ params["w_hh"]
    gi = jax.nn.sigmoid(gates[:, 0 * C:1 * C])
    gf = jax.nn.sigmoid(gates[:, 1 * C:2 * C])
    gg = jnp.tanh(gates[:, 2 * C:3 * C])
    go = jax.nn.sigmoid(gates[:, 3 * C:4 * C])
    c = gf * c + gi * gg
    h = go * jnp.tanh(c)
    pol = jax.nn.softmax(h @ params["w_pi"] + params["b_pi"], axis=-1)
    val = h @ params["w_v"] + params["b_v"]
    return (h, c), (pol, val)

  (h_n, c_n), (pol, val) = jax.lax.scan(step, (h, c), (state, done))
  return pol.reshape(-1, pol.shape[-1]), val.reshape(-1), (h_n[None], c_n[None])


if __name__ == "__main__":
  # Small shapes consistent with the module's forward.
  T, N = 8, 8            # time steps, num_envs
  D_in = 16              # flat input_size
  DENSE = 32             # model.dense_size
  CELL = 32              # cell_size
  A = 4                  # action_size

  key = jax.random.PRNGKey(0)
  ks = jax.random.split(key, 16)

  params = {
      "w_enc": 0.1 * jax.random.normal(ks[0], (D_in, DENSE), jnp.float32),
      "b_enc": 0.1 * jax.random.normal(ks[1], (1, DENSE), jnp.float32),
      "w_ih": 0.1 * jax.random.normal(ks[2], (DENSE, 4 * CELL), jnp.float32),
      "w_hh": 0.1 * jax.random.normal(ks[3], (CELL, 4 * CELL), jnp.float32),
      # combined LSTM bias (b_ih + b_hh in PyTorch's nn.LSTM parameterization)
      "b_lstm": 0.1 * jax.random.normal(ks[4], (1, 4 * CELL), jnp.float32),
      "w_pi": 0.1 * jax.random.normal(ks[5], (CELL, A), jnp.float32),
      "b_pi": 0.1 * jax.random.normal(ks[6], (1, A), jnp.float32),
      "w_v": 0.1 * jax.random.normal(ks[7], (CELL, 1), jnp.float32),
      "b_v": 0.1 * jax.random.normal(ks[8], (1, 1), jnp.float32),
  }

  state = jax.random.normal(ks[9], (T, N, D_in), jnp.float32)
  done = jax.random.bernoulli(ks[10], 0.2, (T, N, 1)).astype(jnp.float32)
  hidden = (0.1 * jax.random.normal(ks[11], (N, CELL), jnp.float32),
            0.1 * jax.random.normal(ks[12], (N, CELL), jnp.float32))

  policy, value, (h_n, c_n) = actor_critic_forward(state, done, hidden, params)
  jax.block_until_ready((policy, value, h_n, c_n))

  # Cross-check against the plain-JAX reference (exact softmax normalization,
  # f32 matmuls -> tight tolerances).
  p_ref, v_ref, (h_ref, c_ref) = reference_forward(state, done, hidden, params)
  assert jnp.allclose(policy, p_ref, atol=1e-4, rtol=1e-4)
  assert jnp.allclose(value, v_ref, atol=1e-4, rtol=1e-4)
  assert jnp.allclose(h_n, h_ref, atol=1e-4, rtol=1e-4)
  assert jnp.allclose(c_n, c_ref, atol=1e-4, rtol=1e-4)

  print("KERNEL_OK")
</pallas_src>

<mosaic_0001>
module attributes {stable_mosaic.version = 11 : i64} {
  func.func @kernel(%arg0: i32, %arg1: memref<8x8x16xf32, #tpu.memory_space<vmem>>, %arg2: memref<8x8x1xf32, #tpu.memory_space<vmem>>, %arg3: memref<8x32xf32, #tpu.memory_space<vmem>>, %arg4: memref<8x32xf32, #tpu.memory_space<vmem>>, %arg5: memref<16x32xf32, #tpu.memory_space<vmem>>, %arg6: memref<1x32xf32, #tpu.memory_space<vmem>>, %arg7: memref<32x128xf32, #tpu.memory_space<vmem>>, %arg8: memref<32x128xf32, #tpu.memory_space<vmem>>, %arg9: memref<1x128xf32, #tpu.memory_space<vmem>>, %arg10: memref<32x128xf32, #tpu.memory_space<vmem>>, %arg11: memref<1x128xf32, #tpu.memory_space<vmem>>, %arg12: memref<8x8x128xf32, #tpu.memory_space<vmem>>, %arg13: memref<8x32xf32, #tpu.memory_space<vmem>>, %arg14: memref<8x32xf32, #tpu.memory_space<vmem>>, %arg15: memref<8x8x128xf32, #tpu.memory_space<vmem>>, %arg16: memref<8x8x32xf32, #tpu.memory_space<vmem>>) attributes {dimension_semantics = [#tpu.dimension_semantics<parallel>], iteration_bounds = array<i64: 1>, scalar_prefetch = 0 : i64, scratch_operands = 2 : i64, tpu.core_type = #tpu.core_type<tc>, window_params = [{transform_indices = @transform_0, window_bounds = array<i64: 8, 8, 16>}, {transform_indices = @transform_1, window_bounds = array<i64: 8, 8, 1>}, {transform_indices = @transform_2, window_bounds = array<i64: 8, 32>}, {transform_indices = @transform_3, window_bounds = array<i64: 8, 32>}, {pipeline_mode = #tpu.pipeline_mode<synchronous>, transform_indices = @transform_4, window_bounds = array<i64: 16, 32>}, {pipeline_mode = #tpu.pipeline_mode<synchronous>, transform_indices = @transform_5, window_bounds = array<i64: 1, 32>}, {pipeline_mode = #tpu.pipeline_mode<synchronous>, transform_indices = @transform_6, window_bounds = array<i64: 32, 128>}, {pipeline_mode = #tpu.pipeline_mode<synchronous>, transform_indices = @transform_7, window_bounds = array<i64: 32, 128>}, {pipeline_mode = #tpu.pipeline_mode<synchronous>, transform_indices = @transform_8, window_bounds = array<i64: 1, 128>}, {pipeline_mode = #tpu.pipeline_mode<synchronous>, transform_indices = @transform_9, window_bounds = array<i64: 32, 128>}, {pipeline_mode = #tpu.pipeline_mode<synchronous>, transform_indices = @transform_10, window_bounds = array<i64: 1, 128>}, {transform_indices = @transform_11, window_bounds = array<i64: 8, 8, 128>}, {transform_indices = @transform_12, window_bounds = array<i64: 8, 32>}, {transform_indices = @transform_13, window_bounds = array<i64: 8, 32>}]} {
    %c0 = arith.constant 0 : index
    %c0_0 = arith.constant 0 : index
    %0 = vector.load %arg5[%c0, %c0_0] : memref<16x32xf32, #tpu.memory_space<vmem>>, vector<16x32xf32>
    %c0_1 = arith.constant 0 : index
    %c0_2 = arith.constant 0 : index
    %1 = vector.load %arg6[%c0_1, %c0_2] : memref<1x32xf32, #tpu.memory_space<vmem>>, vector<1x32xf32>
    %c0_3 = arith.constant 0 : index
    %c0_4 = arith.constant 0 : index
    %2 = vector.load %arg7[%c0_3, %c0_4] : memref<32x128xf32, #tpu.memory_space<vmem>>, vector<32x128xf32>
    %c0_5 = arith.constant 0 : index
    %c0_6 = arith.constant 0 : index
    %3 = vector.load %arg9[%c0_5, %c0_6] : memref<1x128xf32, #tpu.memory_space<vmem>>, vector<1x128xf32>
    %c0_i32 = arith.constant 0 : i32
    %4 = arith.index_cast %c0_i32 : i32 to index
    %c0_7 = arith.constant 0 : index
    %c0_8 = arith.constant 0 : index
    %5 = vector.load %arg1[%4, %c0_7, %c0_8] : memref<8x8x16xf32, #tpu.memory_space<vmem>>, vector<1x8x16xf32>
    %6 = vector.shape_cast %5 : vector<1x8x16xf32> to vector<8x16xf32>
    %cst = arith.constant dense<0.000000e+00> : vector<8x32xf32>
    %7 = tpu.matmul %6, %0, %cst {dimension_numbers = #tpu.dot_dimension_numbers<[1], [0], [0], [1], [0, 0, 1, 1], [], []>} : vector<8x16xf32>, vector<16x32xf32>, vector<8x32xf32> -> vector<8x32xf32>
    %8 = vector.broadcast %1 : vector<1x32xf32> to vector<8x32xf32>
    %9 = arith.addf %7, %8 : vector<8x32xf32>
    %cst_9 = arith.constant 0.000000e+00 : f32
    %10 = vector.broadcast %cst_9 : f32 to vector<8x32xf32>
    %11 = arith.maximumf %9, %10 : vector<8x32xf32>
    %cst_10 = arith.constant dense<0.000000e+00> : vector<8x128xf32>
    %12 = tpu.matmul %11, %2, %cst_10 {dimension_numbers = #tpu.dot_dimension_numbers<[1], [0], [0], [1], [0, 0, 1, 1], [], []>} : vector<8x32xf32>, vector<32x128xf32>, vector<8x128xf32> -> vector<8x128xf32>
    %13 = vector.broadcast %3 : vector<1x128xf32> to vector<8x128xf32>
    %14 = arith.addf %12, %13 : vector<8x128xf32>
    %15 = arith.index_cast %c0_i32 : i32 to index
    %c0_11 = arith.constant 0 : index
    %c0_12 = arith.constant 0 : index
    %16 = vector.load %arg15[%15, %c0_11, %c0_12] : memref<8x8x128xf32, #tpu.memory_space<vmem>>, vector<1x8x128xf32>
    %17 = vector.shape_cast %16 : vector<1x8x128xf32> to vector<8x128xf32>
    %18 = vector.shape_cast %14 : vector<8x128xf32> to vector<1x8x128xf32>
    tpu.vector_store %arg15[%15, %c0_11, %c0_12], %18 {strides = array<i32>} : memref<8x8x128xf32, #tpu.memory_space<vmem>>, vector<1x8x128xf32>,
    %c1_i32 = arith.constant 1 : i32
    %19 = arith.index_cast %c1_i32 : i32 to index
    %c0_13 = arith.constant 0 : index
    %c0_14 = arith.constant 0 : index
    %20 = vector.load %arg1[%19, %c0_13, %c0_14] : memref<8x8x16xf32, #tpu.memory_space<vmem>>, vector<1x8x16xf32>
    %21 = vector.shape_cast %20 : vector<1x8x16xf32> to vector<8x16xf32>
    %cst_15 = arith.constant dense<0.000000e+00> : vector<8x32xf32>
    %22 = tpu.matmul %21, %0, %cst_15 {dimension_numbers = #tpu.dot_dimension_numbers<[1], [0], [0], [1], [0, 0, 1, 1], [], []>} : vector<8x16xf32>, vector<16x32xf32>, vector<8x32xf32> -> vector<8x32xf32>
    %23 = vector.broadcast %1 : vector<1x32xf32> to vector<8x32xf32>
    %24 = arith.addf %22, %23 : vector<8x32xf32>
    %cst_16 = arith.constant 0.000000e+00 : f32
    %25 = vector.broadcast %cst_16 : f32 to vector<8x32xf32>
    %26 = arith.maximumf %24, %25 : vector<8x32xf32>
    %cst_17 = arith.constant dense<0.000000e+00> : vector<8x128xf32>
    %27 = tpu.matmul %26, %2, %cst_17 {dimension_numbers = #tpu.dot_dimension_numbers<[1], [0], [0], [1], [0, 0, 1, 1], [], []>} : vector<8x32xf32>, vector<32x128xf32>, vector<8x128xf32> -> vector<8x128xf32>
    %28 = vector.broadcast %3 : vector<1x128xf32> to vector<8x128xf32>
    %29 = arith.addf %27, %28 : vector<8x128xf32>
    %30 = arith.index_cast %c1_i32 : i32 to index
    %c0_18 = arith.constant 0 : index
    %c0_19 = arith.constant 0 : index
    %31 = vector.load %arg15[%30, %c0_18, %c0_19] : memref<8x8x128xf32, #tpu.memory_space<vmem>>, vector<1x8x128xf32>
    %32 = vector.shape_cast %31 : vector<1x8x128xf32> to vector<8x128xf32>
    %33 = vector.shape_cast %29 : vector<8x128xf32> to vector<1x8x128xf32>
    tpu.vector_store %arg15[%30, %c0_18, %c0_19], %33 {strides = array<i32>} : memref<8x8x128xf32, #tpu.memory_space<vmem>>, vector<1x8x128xf32>,
    %c2_i32 = arith.constant 2 : i32
    %34 = arith.index_cast %c2_i32 : i32 to index
    %c0_20 = arith.constant 0 : index
    %c0_21 = arith.constant 0 : index
    %35 = vector.load %arg1[%34, %c0_20, %c0_21] : memref<8x8x16xf32, #tpu.memory_space<vmem>>, vector<1x8x16xf32>
    %36 = vector.shape_cast %35 : vector<1x8x16xf32> to vector<8x16xf32>
    %cst_22 = arith.constant dense<0.000000e+00> : vector<8x32xf32>
    %37 = tpu.matmul %36, %0, %cst_22 {dimension_numbers = #tpu.dot_dimension_numbers<[1], [0], [0], [1], [0, 0, 1, 1], [], []>} : vector<8x16xf32>, vector<16x32xf32>, vector<8x32xf32> -> vector<8x32xf32>
    %38 = vector.broadcast %1 : vector<1x32xf32> to vector<8x32xf32>
    %39 = arith.addf %37, %38 : vector<8x32xf32>
    %cst_23 = arith.constant 0.000000e+00 : f32
    %40 = vector.broadcast %cst_23 : f32 to vector<8x32xf32>
    %41 = arith.maximumf %39, %40 : vector<8x32xf32>
    %cst_24 = arith.constant dense<0.000000e+00> : vector<8x128xf32>
    %42 = tpu.matmul %41, %2, %cst_24 {dimension_numbers = #tpu.dot_dimension_numbers<[1], [0], [0], [1], [0, 0, 1, 1], [], []>} : vector<8x32xf32>, vector<32x128xf32>, vector<8x128xf32> -> vector<8x128xf32>
    %43 = vector.broadcast %3 : vector<1x128xf32> to vector<8x128xf32>
    %44 = arith.addf %42, %43 : vector<8x128xf32>
    %45 = arith.index_cast %c2_i32 : i32 to index
    %c0_25 = arith.constant 0 : index
    %c0_26 = arith.constant 0 : index
    %46 = vector.load %arg15[%45, %c0_25, %c0_26] : memref<8x8x128xf32, #tpu.memory_space<vmem>>, vector<1x8x128xf32>
    %47 = vector.shape_cast %46 : vector<1x8x128xf32> to vector<8x128xf32>
    %48 = vector.shape_cast %44 : vector<8x128xf32> to vector<1x8x128xf32>
    tpu.vector_store %arg15[%45, %c0_25, %c0_26], %48 {strides = array<i32>} : memref<8x8x128xf32, #tpu.memory_space<vmem>>, vector<1x8x128xf32>,
    %c3_i32 = arith.constant 3 : i32
    %49 = arith.index_cast %c3_i32 : i32 to index
    %c0_27 = arith.constant 0 : index
    %c0_28 = arith.constant 0 : index
    %50 = vector.load %arg1[%49, %c0_27, %c0_28] : memref<8x8x16xf32, #tpu.memory_space<vmem>>, vector<1x8x16xf32>
    %51 = vector.shape_cast %50 : vector<1x8x16xf32> to vector<8x16xf32>
    %cst_29 = arith.constant dense<0.000000e+00> : vector<8x32xf32>
    %52 = tpu.matmul %51, %0, %cst_29 {dimension_numbers = #tpu.dot_dimension_numbers<[1], [0], [0], [1], [0, 0, 1, 1], [], []>} : vector<8x16xf32>, vector<16x32xf32>, vector<8x32xf32> -> vector<8x32xf32>
    %53 = vector.broadcast %1 : vector<1x32xf32> to vector<8x32xf32>
    %54 = arith.addf %52, %53 : vector<8x32xf32>
    %cst_30 = arith.constant 0.000000e+00 : f32
    %55 = vector.broadcast %cst_30 : f32 to vector<8x32xf32>
    %56 = arith.maximumf %54, %55 : vector<8x32xf32>
    %cst_31 = arith.constant dense<0.000000e+00> : vector<8x128xf32>
    %57 = tpu.matmul %56, %2, %cst_31 {dimension_numbers = #tpu.dot_dimension_numbers<[1], [0], [0], [1], [0, 0, 1, 1], [], []>} : vector<8x32xf32>, vector<32x128xf32>, vector<8x128xf32> -> vector<8x128xf32>
    %58 = vector.broadcast %3 : vector<1x128xf32> to vector<8x128xf32>
    %59 = arith.addf %57, %58 : vector<8x128xf32>
    %60 = arith.index_cast %c3_i32 : i32 to index
    %c0_32 = arith.constant 0 : index
    %c0_33 = arith.constant 0 : index
    %61 = vector.load %arg15[%60, %c0_32, %c0_33] : memref<8x8x128xf32, #tpu.memory_space<vmem>>, vector<1x8x128xf32>
    %62 = vector.shape_cast %61 : vector<1x8x128xf32> to vector<8x128xf32>
    %63 = vector.shape_cast %59 : vector<8x128xf32> to vector<1x8x128xf32>
    tpu.vector_store %arg15[%60, %c0_32, %c0_33], %63 {strides = array<i32>} : memref<8x8x128xf32, #tpu.memory_space<vmem>>, vector<1x8x128xf32>,
    %c4_i32 = arith.constant 4 : i32
    %64 = arith.index_cast %c4_i32 : i32 to index
    %c0_34 = arith.constant 0 : index
    %c0_35 = arith.constant 0 : index
    %65 = vector.load %arg1[%64, %c0_34, %c0_35] : memref<8x8x16xf32, #tpu.memory_space<vmem>>, vector<1x8x16xf32>
    %66 = vector.shape_cast %65 : vector<1x8x16xf32> to vector<8x16xf32>
    %cst_36 = arith.constant dense<0.000000e+00> : vector<8x32xf32>
    %67 = tpu.matmul %66, %0, %cst_36 {dimension_numbers = #tpu.dot_dimension_numbers<[1], [0], [0], [1], [0, 0, 1, 1], [], []>} : vector<8x16xf32>, vector<16x32xf32>, vector<8x32xf32> -> vector<8x32xf32>
    %68 = vector.broadcast %1 : vector<1x32xf32> to vector<8x32xf32>
    %69 = arith.addf %67, %68 : vector<8x32xf32>
    %cst_37 = arith.constant 0.000000e+00 : f32
    %70 = vector.broadcast %cst_37 : f32 to vector<8x32xf32>
    %71 = arith.maximumf %69, %70 : vector<8x32xf32>
    %cst_38 = arith.constant dense<0.000000e+00> : vector<8x128xf32>
    %72 = tpu.matmul %71, %2, %cst_38 {dimension_numbers = #tpu.dot_dimension_numbers<[1], [0], [0], [1], [0, 0, 1, 1], [], []>} : vector<8x32xf32>, vector<32x128xf32>, vector<8x128xf32> -> vector<8x128xf32>
    %73 = vector.broadcast %3 : vector<1x128xf32> to vector<8x128xf32>
    %74 = arith.addf %72, %73 : vector<8x128xf32>
    %75 = arith.index_cast %c4_i32 : i32 to index
    %c0_39 = arith.constant 0 : index
    %c0_40 = arith.constant 0 : index
    %76 = vector.load %arg15[%75, %c0_39, %c0_40] : memref<8x8x128xf32, #tpu.memory_space<vmem>>, vector<1x8x128xf32>
    %77 = vector.shape_cast %76 : vector<1x8x128xf32> to vector<8x128xf32>
    %78 = vector.shape_cast %74 : vector<8x128xf32> to vector<1x8x128xf32>
    tpu.vector_store %arg15[%75, %c0_39, %c0_40], %78 {strides = array<i32>} : memref<8x8x128xf32, #tpu.memory_space<vmem>>, vector<1x8x128xf32>,
    %c5_i32 = arith.constant 5 : i32
    %79 = arith.index_cast %c5_i32 : i32 to index
    %c0_41 = arith.constant 0 : index
    %c0_42 = arith.constant 0 : index
    %80 = vector.load %arg1[%79, %c0_41, %c0_42] : memref<8x8x16xf32, #tpu.memory_space<vmem>>, vector<1x8x16xf32>
    %81 = vector.shape_cast %80 : vector<1x8x16xf32> to vector<8x16xf32>
    %cst_43 = arith.constant dense<0.000000e+00> : vector<8x32xf32>
    %82 = tpu.matmul %81, %0, %cst_43 {dimension_numbers = #tpu.dot_dimension_numbers<[1], [0], [0], [1], [0, 0, 1, 1], [], []>} : vector<8x16xf32>, vector<16x32xf32>, vector<8x32xf32> -> vector<8x32xf32>
    %83 = vector.broadcast %1 : vector<1x32xf32> to vector<8x32xf32>
    %84 = arith.addf %82, %83 : vector<8x32xf32>
    %cst_44 = arith.constant 0.000000e+00 : f32
    %85 = vector.broadcast %cst_44 : f32 to vector<8x32xf32>
    %86 = arith.maximumf %84, %85 : vector<8x32xf32>
    %cst_45 = arith.constant dense<0.000000e+00> : vector<8x128xf32>
    %87 = tpu.matmul %86, %2, %cst_45 {dimension_numbers = #tpu.dot_dimension_numbers<[1], [0], [0], [1], [0, 0, 1, 1], [], []>} : vector<8x32xf32>, vector<32x128xf32>, vector<8x128xf32> -> vector<8x128xf32>
    %88 = vector.broadcast %3 : vector<1x128xf32> to vector<8x128xf32>
    %89 = arith.addf %87, %88 : vector<8x128xf32>
    %90 = arith.index_cast %c5_i32 : i32 to index
    %c0_46 = arith.constant 0 : index
    %c0_47 = arith.constant 0 : index
    %91 = vector.load %arg15[%90, %c0_46, %c0_47] : memref<8x8x128xf32, #tpu.memory_space<vmem>>, vector<1x8x128xf32>
    %92 = vector.shape_cast %91 : vector<1x8x128xf32> to vector<8x128xf32>
    %93 = vector.shape_cast %89 : vector<8x128xf32> to vector<1x8x128xf32>
    tpu.vector_store %arg15[%90, %c0_46, %c0_47], %93 {strides = array<i32>} : memref<8x8x128xf32, #tpu.memory_space<vmem>>, vector<1x8x128xf32>,
    %c6_i32 = arith.constant 6 : i32
    %94 = arith.index_cast %c6_i32 : i32 to index
    %c0_48 = arith.constant 0 : index
    %c0_49 = arith.constant 0 : index
    %95 = vector.load %arg1[%94, %c0_48, %c0_49] : memref<8x8x16xf32, #tpu.memory_space<vmem>>, vector<1x8x16xf32>
    %96 = vector.shape_cast %95 : vector<1x8x16xf32> to vector<8x16xf32>
    %cst_50 = arith.constant dense<0.000000e+00> : vector<8x32xf32>
    %97 = tpu.matmul %96, %0, %cst_50 {dimension_numbers = #tpu.dot_dimension_numbers<[1], [0], [0], [1], [0, 0, 1, 1], [], []>} : vector<8x16xf32>, vector<16x32xf32>, vector<8x32xf32> -> vector<8x32xf32>
    %98 = vector.broadcast %1 : vector<1x32xf32> to vector<8x32xf32>
    %99 = arith.addf %97, %98 : vector<8x32xf32>
    %cst_51 = arith.constant 0.000000e+00 : f32
    %100 = vector.broadcast %cst_51 : f32 to vector<8x32xf32>
    %101 = arith.maximumf %99, %100 : vector<8x32xf32>
    %cst_52 = arith.constant dense<0.000000e+00> : vector<8x128xf32>
    %102 = tpu.matmul %101, %2, %cst_52 {dimension_numbers = #tpu.dot_dimension_numbers<[1], [0], [0], [1], [0, 0, 1, 1], [], []>} : vector<8x32xf32>, vector<32x128xf32>, vector<8x128xf32> -> vector<8x128xf32>
    %103 = vector.broadcast %3 : vector<1x128xf32> to vector<8x128xf32>
    %104 = arith.addf %102, %103 : vector<8x128xf32>
    %105 = arith.index_cast %c6_i32 : i32 to index
    %c0_53 = arith.constant 0 : index
    %c0_54 = arith.constant 0 : index
    %106 = vector.load %arg15[%105, %c0_53, %c0_54] : memref<8x8x128xf32, #tpu.memory_space<vmem>>, vector<1x8x128xf32>
    %107 = vector.shape_cast %106 : vector<1x8x128xf32> to vector<8x128xf32>
    %108 = vector.shape_cast %104 : vector<8x128xf32> to vector<1x8x128xf32>
    tpu.vector_store %arg15[%105, %c0_53, %c0_54], %108 {strides = array<i32>} : memref<8x8x128xf32, #tpu.memory_space<vmem>>, vector<1x8x128xf32>,
    %c7_i32 = arith.constant 7 : i32
    %109 = arith.index_cast %c7_i32 : i32 to index
    %c0_55 = arith.constant 0 : index
    %c0_56 = arith.constant 0 : index
    %110 = vector.load %arg1[%109, %c0_55, %c0_56] : memref<8x8x16xf32, #tpu.memory_space<vmem>>, vector<1x8x16xf32>
    %111 = vector.shape_cast %110 : vector<1x8x16xf32> to vector<8x16xf32>
    %cst_57 = arith.constant dense<0.000000e+00> : vector<8x32xf32>
    %112 = tpu.matmul %111, %0, %cst_57 {dimension_numbers = #tpu.dot_dimension_numbers<[1], [0], [0], [1], [0, 0, 1, 1], [], []>} : vector<8x16xf32>, vector<16x32xf32>, vector<8x32xf32> -> vector<8x32xf32>
    %113 = vector.broadcast %1 : vector<1x32xf32> to vector<8x32xf32>
    %114 = arith.addf %112, %113 : vector<8x32xf32>
    %cst_58 = arith.constant 0.000000e+00 : f32
    %115 = vector.broadcast %cst_58 : f32 to vector<8x32xf32>
    %116 = arith.maximumf %114, %115 : vector<8x32xf32>
    %cst_59 = arith.constant dense<0.000000e+00> : vector<8x128xf32>
    %117 = tpu.matmul %116, %2, %cst_59 {dimension_numbers = #tpu.dot_dimension_numbers<[1], [0], [0], [1], [0, 0, 1, 1], [], []>} : vector<8x32xf32>, vector<32x128xf32>, vector<8x128xf32> -> vector<8x128xf32>
    %118 = vector.broadcast %3 : vector<1x128xf32> to vector<8x128xf32>
    %119 = arith.addf %117, %118 : vector<8x128xf32>
    %120 = arith.index_cast %c7_i32 : i32 to index
    %c0_60 = arith.constant 0 : index
    %c0_61 = arith.constant 0 : index
    %121 = vector.load %arg15[%120, %c0_60, %c0_61] : memref<8x8x128xf32, #tpu.memory_space<vmem>>, vector<1x8x128xf32>
    %122 = vector.shape_cast %121 : vector<1x8x128xf32> to vector<8x128xf32>
    %123 = vector.shape_cast %119 : vector<8x128xf32> to vector<1x8x128xf32>
    tpu.vector_store %arg15[%120, %c0_60, %c0_61], %123 {strides = array<i32>} : memref<8x8x128xf32, #tpu.memory_space<vmem>>, vector<1x8x128xf32>,
    %c8_i32 = arith.constant 8 : i32
    %c0_62 = arith.constant 0 : index
    %c0_63 = arith.constant 0 : index
    %124 = vector.load %arg8[%c0_62, %c0_63] : memref<32x128xf32, #tpu.memory_space<vmem>>, vector<32x128xf32>
    %125 = tpu.iota {dimensions = array<i32: 1>} : vector<1x128xi32>
    %c64_i32 = arith.constant 64 : i32
    %126 = vector.broadcast %c64_i32 : i32 to vector<1x128xi32>
    %127 = arith.cmpi sge, %125, %126 : vector<1x128xi32>
    %c96_i32 = arith.constant 96 : i32
    %128 = vector.broadcast %c96_i32 : i32 to vector<1x128xi32>
    %129 = arith.cmpi slt, %125, %128 : vector<1x128xi32>
    %130 = arith.andi %127, %129 : vector<1x128xi1>
    %cst_64 = arith.constant 1.000000e+00 : f32
    %cst_65 = arith.constant 5.000000e-01 : f32
    %131 = vector.broadcast %cst_64 : f32 to vector<1x128xf32>
    %132 = vector.broadcast %cst_65 : f32 to vector<1x128xf32>
    %133 = arith.select %130, %131, %132 : vector<1x128xi1>, vector<1x128xf32>
    %cst_66 = arith.constant 0.000000e+00 : f32
    %cst_67 = arith.constant 5.000000e-01 : f32
    %134 = vector.broadcast %cst_66 : f32 to vector<1x128xf32>
    %135 = vector.broadcast %cst_67 : f32 to vector<1x128xf32>
    %136 = arith.select %130, %134, %135 : vector<1x128xi1>, vector<1x128xf32>
    %c0_68 = arith.constant 0 : index
    %c0_69 = arith.constant 0 : index
    %137 = vector.load %arg3[%c0_68, %c0_69] : memref<8x32xf32, #tpu.memory_space<vmem>>, vector<8x32xf32>
    %c0_70 = arith.constant 0 : index
    %c0_71 = arith.constant 0 : index
    %138 = vector.load %arg4[%c0_70, %c0_71] : memref<8x32xf32, #tpu.memory_space<vmem>>, vector<8x32xf32>
    %c0_i32_72 = arith.constant 0 : i32
    %139 = arith.index_cast %c0_i32_72 : i32 to index
    %c0_73 = arith.constant 0 : index
    %c0_74 = arith.constant 0 : index
    %140 = vector.load %arg2[%139, %c0_73, %c0_74] : memref<8x8x1xf32, #tpu.memory_space<vmem>>, vector<1x8x1xf32>
    %141 = vector.shape_cast %140 : vector<1x8x1xf32> to vector<8x1xf32>
    %142 = vector.broadcast %141 : vector<8x1xf32> to vector<8x32xf32>
    %143 = arith.mulf %137, %142 : vector<8x32xf32>
    %144 = vector.broadcast %141 : vector<8x1xf32> to vector<8x32xf32>
    %145 = arith.mulf %138, %144 : vector<8x32xf32>
    %146 = arith.index_cast %c0_i32_72 : i32 to index
    %c0_75 = arith.constant 0 : index
    %c0_76 = arith.constant 0 : index
    %147 = vector.load %arg15[%146, %c0_75, %c0_76] : memref<8x8x128xf32, #tpu.memory_space<vmem>>, vector<1x8x128xf32>
    %148 = vector.shape_cast %147 : vector<1x8x128xf32> to vector<8x128xf32>
    %cst_77 = arith.constant dense<0.000000e+00> : vector<8x128xf32>
    %149 = tpu.matmul %143, %124, %cst_77 {dimension_numbers = #tpu.dot_dimension_numbers<[1], [0], [0], [1], [0, 0, 1, 1], [], []>} : vector<8x32xf32>, vector<32x128xf32>, vector<8x128xf32> -> vector<8x128xf32>
    %150 = arith.addf %148, %149 : vector<8x128xf32>
    %151 = vector.broadcast %133 : vector<1x128xf32> to vector<8x128xf32>
    %152 = arith.mulf %150, %151 : vector<8x128xf32>
    %153 = math.tanh %152 : vector<8x128xf32>
    %154 = vector.broadcast %133 : vector<1x128xf32> to vector<8x128xf32>
    %155 = arith.mulf %153, %154 : vector<8x128xf32>
    %156 = vector.broadcast %136 : vector<1x128xf32> to vector<8x128xf32>
    %157 = arith.addf %155, %156 : vector<8x128xf32>
    %158 = vector.extract_strided_slice %157 {offsets = [0, 0], sizes = [8, 32], strides = [1, 1]} : vector<8x128xf32> to vector<8x32xf32>
    %159 = vector.extract_strided_slice %157 {offsets = [0, 32], sizes = [8, 32], strides = [1, 1]} : vector<8x128xf32> to vector<8x32xf32>
    %160 = vector.extract_strided_slice %157 {offsets = [0, 64], sizes = [8, 32], strides = [1, 1]} : vector<8x128xf32> to vector<8x32xf32>
    %161 = vector.extract_strided_slice %157 {offsets = [0, 96], sizes = [8, 32], strides = [1, 1]} : vector<8x128xf32> to vector<8x32xf32>
    %162 = arith.mulf %159, %145 : vector<8x32xf32>
    %163 = arith.mulf %158, %160 : vector<8x32xf32>
    %164 = arith.addf %162, %163 : vector<8x32xf32>
    %165 = math.tanh %164 : vector<8x32xf32>
    %166 = arith.mulf %161, %165 : vector<8x32xf32>
    %167 = arith.index_cast %c0_i32_72 : i32 to index
    %c0_78 = arith.constant 0 : index
    %c0_79 = arith.constant 0 : index
    %168 = vector.load %arg16[%167, %c0_78, %c0_79] : memref<8x8x32xf32, #tpu.memory_space<vmem>>, vector<1x8x32xf32>
    %169 = vector.shape_cast %168 : vector<1x8x32xf32> to vector<8x32xf32>
    %170 = vector.shape_cast %166 : vector<8x32xf32> to vector<1x8x32xf32>
    tpu.vector_store %arg16[%167, %c0_78, %c0_79], %170 {strides = array<i32>} : memref<8x8x32xf32, #tpu.memory_space<vmem>>, vector<1x8x32xf32>,
    %c1_i32_80 = arith.constant 1 : i32
    %171 = arith.index_cast %c1_i32_80 : i32 to index
    %c0_81 = arith.constant 0 : index
    %c0_82 = arith.constant 0 : index
    %172 = vector.load %arg2[%171, %c0_81, %c0_82] : memref<8x8x1xf32, #tpu.memory_space<vmem>>, vector<1x8x1xf32>
    %173 = vector.shape_cast %172 : vector<1x8x1xf32> to vector<8x1xf32>
    %174 = vector.broadcast %173 : vector<8x1xf32> to vector<8x32xf32>
    %175 = arith.mulf %166, %174 : vector<8x32xf32>
    %176 = vector.broadcast %173 : vector<8x1xf32> to vector<8x32xf32>
    %177 = arith.mulf %164, %176 : vector<8x32xf32>
    %178 = arith.index_cast %c1_i32_80 : i32 to index
    %c0_83 = arith.constant 0 : index
    %c0_84 = arith.constant 0 : index
    %179 = vector.load %arg15[%178, %c0_83, %c0_84] : memref<8x8x128xf32, #tpu.memory_space<vmem>>, vector<1x8x128xf32>
    %180 = vector.shape_cast %179 : vector<1x8x128xf32> to vector<8x128xf32>
    %cst_85 = arith.constant dense<0.000000e+00> : vector<8x128xf32>
    %181 = tpu.matmul %175, %124, %cst_85 {dimension_numbers = #tpu.dot_dimension_numbers<[1], [0], [0], [1], [0, 0, 1, 1], [], []>} : vector<8x32xf32>, vector<32x128xf32>, vector<8x128xf32> -> vector<8x128xf32>
    %182 = arith.addf %180, %181 : vector<8x128xf32>
    %183 = vector.broadcast %133 : vector<1x128xf32> to vector<8x128xf32>
    %184 = arith.mulf %182, %183 : vector<8x128xf32>
    %185 = math.tanh %184 : vector<8x128xf32>
    %186 = vector.broadcast %133 : vector<1x128xf32> to vector<8x128xf32>
    %187 = arith.mulf %185, %186 : vector<8x128xf32>
    %188 = vector.broadcast %136 : vector<1x128xf32> to vector<8x128xf32>
    %189 = arith.addf %187, %188 : vector<8x128xf32>
    %190 = vector.extract_strided_slice %189 {offsets = [0, 0], sizes = [8, 32], strides = [1, 1]} : vector<8x128xf32> to vector<8x32xf32>
    %191 = vector.extract_strided_slice %189 {offsets = [0, 32], sizes = [8, 32], strides = [1, 1]} : vector<8x128xf32> to vector<8x32xf32>
    %192 = vector.extract_strided_slice %189 {offsets = [0, 64], sizes = [8, 32], strides = [1, 1]} : vector<8x128xf32> to vector<8x32xf32>
    %193 = vector.extract_strided_slice %189 {offsets = [0, 96], sizes = [8, 32], strides = [1, 1]} : vector<8x128xf32> to vector<8x32xf32>
    %194 = arith.mulf %191, %177 : vector<8x32xf32>
    %195 = arith.mulf %190, %192 : vector<8x32xf32>
    %196 = arith.addf %194, %195 : vector<8x32xf32>
    %197 = math.tanh %196 : vector<8x32xf32>
    %198 = arith.mulf %193, %197 : vector<8x32xf32>
    %199 = arith.index_cast %c1_i32_80 : i32 to index
    %c0_86 = arith.constant 0 : index
    %c0_87 = arith.constant 0 : index
    %200 = vector.load %arg16[%199, %c0_86, %c0_87] : memref<8x8x32xf32, #tpu.memory_space<vmem>>, vector<1x8x32xf32>
    %201 = vector.shape_cast %200 : vector<1x8x32xf32> to vector<8x32xf32>
    %202 = vector.shape_cast %198 : vector<8x32xf32> to vector<1x8x32xf32>
    tpu.vector_store %arg16[%199, %c0_86, %c0_87], %202 {strides = array<i32>} : memref<8x8x32xf32, #tpu.memory_space<vmem>>, vector<1x8x32xf32>,
    %c2_i32_88 = arith.constant 2 : i32
    %203 = arith.index_cast %c2_i32_88 : i32 to index
    %c0_89 = arith.constant 0 : index
    %c0_90 = arith.constant 0 : index
    %204 = vector.load %arg2[%203, %c0_89, %c0_90] : memref<8x8x1xf32, #tpu.memory_space<vmem>>, vector<1x8x1xf32>
    %205 = vector.shape_cast %204 : vector<1x8x1xf32> to vector<8x1xf32>
    %206 = vector.broadcast %205 : vector<8x1xf32> to vector<8x32xf32>
    %207 = arith.mulf %198, %206 : vector<8x32xf32>
    %208 = vector.broadcast %205 : vector<8x1xf32> to vector<8x32xf32>
    %209 = arith.mulf %196, %208 : vector<8x32xf32>
    %210 = arith.index_cast %c2_i32_88 : i32 to index
    %c0_91 = arith.constant 0 : index
    %c0_92 = arith.constant 0 : index
    %211 = vector.load %arg15[%210, %c0_91, %c0_92] : memref<8x8x128xf32, #tpu.memory_space<vmem>>, vector<1x8x128xf32>
    %212 = vector.shape_cast %211 : vector<1x8x128xf32> to vector<8x128xf32>
    %cst_93 = arith.constant dense<0.000000e+00> : vector<8x128xf32>
    %213 = tpu.matmul %207, %124, %cst_93 {dimension_numbers = #tpu.dot_dimension_numbers<[1], [0], [0], [1], [0, 0, 1, 1], [], []>} : vector<8x32xf32>, vector<32x128xf32>, vector<8x128xf32> -> vector<8x128xf32>
    %214 = arith.addf %212, %213 : vector<8x128xf32>
    %215 = vector.broadcast %133 : vector<1x128xf32> to vector<8x128xf32>
    %216 = arith.mulf %214, %215 : vector<8x128xf32>
    %217 = math.tanh %216 : vector<8x128xf32>
    %218 = vector.broadcast %133 : vector<1x128xf32> to vector<8x128xf32>
    %219 = arith.mulf %217, %218 : vector<8x128xf32>
    %220 = vector.broadcast %136 : vector<1x128xf32> to vector<8x128xf32>
    %221 = arith.addf %219, %220 : vector<8x128xf32>
    %222 = vector.extract_strided_slice %221 {offsets = [0, 0], sizes = [8, 32], strides = [1, 1]} : vector<8x128xf32> to vector<8x32xf32>
    %223 = vector.extract_strided_slice %221 {offsets = [0, 32], sizes = [8, 32], strides = [1, 1]} : vector<8x128xf32> to vector<8x32xf32>
    %224 = vector.extract_strided_slice %221 {offsets = [0, 64], sizes = [8, 32], strides = [1, 1]} : vector<8x128xf32> to vector<8x32xf32>
    %225 = vector.extract_strided_slice %221 {offsets = [0, 96], sizes = [8, 32], strides = [1, 1]} : vector<8x128xf32> to vector<8x32xf32>
    %226 = arith.mulf %223, %209 : vector<8x32xf32>
    %227 = arith.mulf %222, %224 : vector<8x32xf32>
    %228 = arith.addf %226, %227 : vector<8x32xf32>
    %229 = math.tanh %228 : vector<8x32xf32>
    %230 = arith.mulf %225, %229 : vector<8x32xf32>
    %231 = arith.index_cast %c2_i32_88 : i32 to index
    %c0_94 = arith.constant 0 : index
    %c0_95 = arith.constant 0 : index
    %232 = vector.load %arg16[%231, %c0_94, %c0_95] : memref<8x8x32xf32, #tpu.memory_space<vmem>>, vector<1x8x32xf32>
    %233 = vector.shape_cast %232 : vector<1x8x32xf32> to vector<8x32xf32>
    %234 = vector.shape_cast %230 : vector<8x32xf32> to vector<1x8x32xf32>
    tpu.vector_store %arg16[%231, %c0_94, %c0_95], %234 {strides = array<i32>} : memref<8x8x32xf32, #tpu.memory_space<vmem>>, vector<1x8x32xf32>,
    %c3_i32_96 = arith.constant 3 : i32
    %235 = arith.index_cast %c3_i32_96 : i32 to index
    %c0_97 = arith.constant 0 : index
    %c0_98 = arith.constant 0 : index
    %236 = vector.load %arg2[%235, %c0_97, %c0_98] : memref<8x8x1xf32, #tpu.memory_space<vmem>>, vector<1x8x1xf32>
    %237 = vector.shape_cast %236 : vector<1x8x1xf32> to vector<8x1xf32>
    %238 = vector.broadcast %237 : vector<8x1xf32> to vector<8x32xf32>
    %239 = arith.mulf %230, %238 : vector<8x32xf32>
    %240 = vector.broadcast %237 : vector<8x1xf32> to vector<8x32xf32>
    %241 = arith.mulf %228, %240 : vector<8x32xf32>
    %242 = arith.index_cast %c3_i32_96 : i32 to index
    %c0_99 = arith.constant 0 : index
    %c0_100 = arith.constant 0 : index
    %243 = vector.load %arg15[%242, %c0_99, %c0_100] : memref<8x8x128xf32, #tpu.memory_space<vmem>>, vector<1x8x128xf32>
    %244 = vector.shape_cast %243 : vector<1x8x128xf32> to vector<8x128xf32>
    %cst_101 = arith.constant dense<0.000000e+00> : vector<8x128xf32>
    %245 = tpu.matmul %239, %124, %cst_101 {dimension_numbers = #tpu.dot_dimension_numbers<[1], [0], [0], [1], [0, 0, 1, 1], [], []>} : vector<8x32xf32>, vector<32x128xf32>, vector<8x128xf32> -> vector<8x128xf32>
    %246 = arith.addf %244, %245 : vector<8x128xf32>
    %247 = vector.broadcast %133 : vector<1x128xf32> to vector<8x128xf32>
    %248 = arith.mulf %246, %247 : vector<8x128xf32>
    %249 = math.tanh %248 : vector<8x128xf32>
    %250 = vector.broadcast %133 : vector<1x128xf32> to vector<8x128xf32>
    %251 = arith.mulf %249, %250 : vector<8x128xf32>
    %252 = vector.broadcast %136 : vector<1x128xf32> to vector<8x128xf32>
    %253 = arith.addf %251, %252 : vector<8x128xf32>
    %254 = vector.extract_strided_slice %253 {offsets = [0, 0], sizes = [8, 32], strides = [1, 1]} : vector<8x128xf32> to vector<8x32xf32>
    %255 = vector.extract_strided_slice %253 {offsets = [0, 32], sizes = [8, 32], strides = [1, 1]} : vector<8x128xf32> to vector<8x32xf32>
    %256 = vector.extract_strided_slice %253 {offsets = [0, 64], sizes = [8, 32], strides = [1, 1]} : vector<8x128xf32> to vector<8x32xf32>
    %257 = vector.extract_strided_slice %253 {offsets = [0, 96], sizes = [8, 32], strides = [1, 1]} : vector<8x128xf32> to vector<8x32xf32>
    %258 = arith.mulf %255, %241 : vector<8x32xf32>
    %259 = arith.mulf %254, %256 : vector<8x32xf32>
    %260 = arith.addf %258, %259 : vector<8x32xf32>
    %261 = math.tanh %260 : vector<8x32xf32>
    %262 = arith.mulf %257, %261 : vector<8x32xf32>
    %263 = arith.index_cast %c3_i32_96 : i32 to index
    %c0_102 = arith.constant 0 : index
    %c0_103 = arith.constant 0 : index
    %264 = vector.load %arg16[%263, %c0_102, %c0_103] : memref<8x8x32xf32, #tpu.memory_space<vmem>>, vector<1x8x32xf32>
    %265 = vector.shape_cast %264 : vector<1x8x32xf32> to vector<8x32xf32>
    %266 = vector.shape_cast %262 : vector<8x32xf32> to vector<1x8x32xf32>
    tpu.vector_store %arg16[%263, %c0_102, %c0_103], %266 {strides = array<i32>} : memref<8x8x32xf32, #tpu.memory_space<vmem>>, vector<1x8x32xf32>,
    %c4_i32_104 = arith.constant 4 : i32
    %267 = arith.index_cast %c4_i32_104 : i32 to index
    %c0_105 = arith.constant 0 : index
    %c0_106 = arith.constant 0 : index
    %268 = vector.load %arg2[%267, %c0_105, %c0_106] : memref<8x8x1xf32, #tpu.memory_space<vmem>>, vector<1x8x1xf32>
    %269 = vector.shape_cast %268 : vector<1x8x1xf32> to vector<8x1xf32>
    %270 = vector.broadcast %269 : vector<8x1xf32> to vector<8x32xf32>
    %271 = arith.mulf %262, %270 : vector<8x32xf32>
    %272 = vector.broadcast %269 : vector<8x1xf32> to vector<8x32xf32>
    %273 = arith.mulf %260, %272 : vector<8x32xf32>
    %274 = arith.index_cast %c4_i32_104 : i32 to index
    %c0_107 = arith.constant 0 : index
    %c0_108 = arith.constant 0 : index
    %275 = vector.load %arg15[%274, %c0_107, %c0_108] : memref<8x8x128xf32, #tpu.memory_space<vmem>>, vector<1x8x128xf32>
    %276 = vector.shape_cast %275 : vector<1x8x128xf32> to vector<8x128xf32>
    %cst_109 = arith.constant dense<0.000000e+00> : vector<8x128xf32>
    %277 = tpu.matmul %271, %124, %cst_109 {dimension_numbers = #tpu.dot_dimension_numbers<[1], [0], [0], [1], [0, 0, 1, 1], [], []>} : vector<8x32xf32>, vector<32x128xf32>, vector<8x128xf32> -> vector<8x128xf32>
    %278 = arith.addf %276, %277 : vector<8x128xf32>
    %279 = vector.broadcast %133 : vector<1x128xf32> to vector<8x128xf32>
    %280 = arith.mulf %278, %279 : vector<8x128xf32>
    %281 = math.tanh %280 : vector<8x128xf32>
    %282 = vector.broadcast %133 : vector<1x128xf32> to vector<8x128xf32>
    %283 = arith.mulf %281, %282 : vector<8x128xf32>
    %284 = vector.broadcast %136 : vector<1x128xf32> to vector<8x128xf32>
    %285 = arith.addf %283, %284 : vector<8x128xf32>
    %286 = vector.extract_strided_slice %285 {offsets = [0, 0], sizes = [8, 32], strides = [1, 1]} : vector<8x128xf32> to vector<8x32xf32>
    %287 = vector.extract_strided_slice %285 {offsets = [0, 32], sizes = [8, 32], strides = [1, 1]} : vector<8x128xf32> to vector<8x32xf32>
    %288 = vector.extract_strided_slice %285 {offsets = [0, 64], sizes = [8, 32], strides = [1, 1]} : vector<8x128xf32> to vector<8x32xf32>
    %289 = vector.extract_strided_slice %285 {offsets = [0, 96], sizes = [8, 32], strides = [1, 1]} : vector<8x128xf32> to vector<8x32xf32>
    %290 = arith.mulf %287, %273 : vector<8x32xf32>
    %291 = arith.mulf %286, %288 : vector<8x32xf32>
    %292 = arith.addf %290, %291 : vector<8x32xf32>
    %293 = math.tanh %292 : vector<8x32xf32>
    %294 = arith.mulf %289, %293 : vector<8x32xf32>
    %295 = arith.index_cast %c4_i32_104 : i32 to index
    %c0_110 = arith.constant 0 : index
    %c0_111 = arith.constant 0 : index
    %296 = vector.load %arg16[%295, %c0_110, %c0_111] : memref<8x8x32xf32, #tpu.memory_space<vmem>>, vector<1x8x32xf32>
    %297 = vector.shape_cast %296 : vector<1x8x32xf32> to vector<8x32xf32>
    %298 = vector.shape_cast %294 : vector<8x32xf32> to vector<1x8x32xf32>
    tpu.vector_store %arg16[%295, %c0_110, %c0_111], %298 {strides = array<i32>} : memref<8x8x32xf32, #tpu.memory_space<vmem>>, vector<1x8x32xf32>,
    %c5_i32_112 = arith.constant 5 : i32
    %299 = arith.index_cast %c5_i32_112 : i32 to index
    %c0_113 = arith.constant 0 : index
    %c0_114 = arith.constant 0 : index
    %300 = vector.load %arg2[%299, %c0_113, %c0_114] : memref<8x8x1xf32, #tpu.memory_space<vmem>>, vector<1x8x1xf32>
    %301 = vector.shape_cast %300 : vector<1x8x1xf32> to vector<8x1xf32>
    %302 = vector.broadcast %301 : vector<8x1xf32> to vector<8x32xf32>
    %303 = arith.mulf %294, %302 : vector<8x32xf32>
    %304 = vector.broadcast %301 : vector<8x1xf32> to vector<8x32xf32>
    %305 = arith.mulf %292, %304 : vector<8x32xf32>
    %306 = arith.index_cast %c5_i32_112 : i32 to index
    %c0_115 = arith.constant 0 : index
    %c0_116 = arith.constant 0 : index
    %307 = vector.load %arg15[%306, %c0_115, %c0_116] : memref<8x8x128xf32, #tpu.memory_space<vmem>>, vector<1x8x128xf32>
    %308 = vector.shape_cast %307 : vector<1x8x128xf32> to vector<8x128xf32>
    %cst_117 = arith.constant dense<0.000000e+00> : vector<8x128xf32>
    %309 = tpu.matmul %303, %124, %cst_117 {dimension_numbers = #tpu.dot_dimension_numbers<[1], [0], [0], [1], [0, 0, 1, 1], [], []>} : vector<8x32xf32>, vector<32x128xf32>, vector<8x128xf32> -> vector<8x128xf32>
    %310 = arith.addf %308, %309 : vector<8x128xf32>
    %311 = vector.broadcast %133 : vector<1x128xf32> to vector<8x128xf32>
    %312 = arith.mulf %310, %311 : vector<8x128xf32>
    %313 = math.tanh %312 : vector<8x128xf32>
    %314 = vector.broadcast %133 : vector<1x128xf32> to vector<8x128xf32>
    %315 = arith.mulf %313, %314 : vector<8x128xf32>
    %316 = vector.broadcast %136 : vector<1x128xf32> to vector<8x128xf32>
    %317 = arith.addf %315, %316 : vector<8x128xf32>
    %318 = vector.extract_strided_slice %317 {offsets = [0, 0], sizes = [8, 32], strides = [1, 1]} : vector<8x128xf32> to vector<8x32xf32>
    %319 = vector.extract_strided_slice %317 {offsets = [0, 32], sizes = [8, 32], strides = [1, 1]} : vector<8x128xf32> to vector<8x32xf32>
    %320 = vector.extract_strided_slice %317 {offsets = [0, 64], sizes = [8, 32], strides = [1, 1]} : vector<8x128xf32> to vector<8x32xf32>
    %321 = vector.extract_strided_slice %317 {offsets = [0, 96], sizes = [8, 32], strides = [1, 1]} : vector<8x128xf32> to vector<8x32xf32>
    %322 = arith.mulf %319, %305 : vector<8x32xf32>
    %323 = arith.mulf %318, %320 : vector<8x32xf32>
    %324 = arith.addf %322, %323 : vector<8x32xf32>
    %325 = math.tanh %324 : vector<8x32xf32>
    %326 = arith.mulf %321, %325 : vector<8x32xf32>
    %327 = arith.index_cast %c5_i32_112 : i32 to index
    %c0_118 = arith.constant 0 : index
    %c0_119 = arith.constant 0 : index
    %328 = vector.load %arg16[%327, %c0_118, %c0_119] : memref<8x8x32xf32, #tpu.memory_space<vmem>>, vector<1x8x32xf32>
    %329 = vector.shape_cast %328 : vector<1x8x32xf32> to vector<8x32xf32>
    %330 = vector.shape_cast %326 : vector<8x32xf32> to vector<1x8x32xf32>
    tpu.vector_store %arg16[%327, %c0_118, %c0_119], %330 {strides = array<i32>} : memref<8x8x32xf32, #tpu.memory_space<vmem>>, vector<1x8x32xf32>,
    %c6_i32_120 = arith.constant 6 : i32
    %331 = arith.index_cast %c6_i32_120 : i32 to index
    %c0_121 = arith.constant 0 : index
    %c0_122 = arith.constant 0 : index
    %332 = vector.load %arg2[%331, %c0_121, %c0_122] : memref<8x8x1xf32, #tpu.memory_space<vmem>>, vector<1x8x1xf32>
    %333 = vector.shape_cast %332 : vector<1x8x1xf32> to vector<8x1xf32>
    %334 = vector.broadcast %333 : vector<8x1xf32> to vector<8x32xf32>
    %335 = arith.mulf %326, %334 : vector<8x32xf32>
    %336 = vector.broadcast %333 : vector<8x1xf32> to vector<8x32xf32>
    %337 = arith.mulf %324, %336 : vector<8x32xf32>
    %338 = arith.index_cast %c6_i32_120 : i32 to index
    %c0_123 = arith.constant 0 : index
    %c0_124 = arith.constant 0 : index
    %339 = vector.load %arg15[%338, %c0_123, %c0_124] : memref<8x8x128xf32, #tpu.memory_space<vmem>>, vector<1x8x128xf32>
    %340 = vector.shape_cast %339 : vector<1x8x128xf32> to vector<8x128xf32>
    %cst_125 = arith.constant dense<0.000000e+00> : vector<8x128xf32>
    %341 = tpu.matmul %335, %124, %cst_125 {dimension_numbers = #tpu.dot_dimension_numbers<[1], [0], [0], [1], [0, 0, 1, 1], [], []>} : vector<8x32xf32>, vector<32x128xf32>, vector<8x128xf32> -> vector<8x128xf32>
    %342 = arith.addf %340, %341 : vector<8x128xf32>
    %343 = vector.broadcast %133 : vector<1x128xf32> to vector<8x128xf32>
    %344 = arith.mulf %342, %343 : vector<8x128xf32>
    %345 = math.tanh %344 : vector<8x128xf32>
    %346 = vector.broadcast %133 : vector<1x128xf32> to vector<8x128xf32>
    %347 = arith.mulf %345, %346 : vector<8x128xf32>
    %348 = vector.broadcast %136 : vector<1x128xf32> to vector<8x128xf32>
    %349 = arith.addf %347, %348 : vector<8x128xf32>
    %350 = vector.extract_strided_slice %349 {offsets = [0, 0], sizes = [8, 32], strides = [1, 1]} : vector<8x128xf32> to vector<8x32xf32>
    %351 = vector.extract_strided_slice %349 {offsets = [0, 32], sizes = [8, 32], strides = [1, 1]} : vector<8x128xf32> to vector<8x32xf32>
    %352 = vector.extract_strided_slice %349 {offsets = [0, 64], sizes = [8, 32], strides = [1, 1]} : vector<8x128xf32> to vector<8x32xf32>
    %353 = vector.extract_strided_slice %349 {offsets = [0, 96], sizes = [8, 32], strides = [1, 1]} : vector<8x128xf32> to vector<8x32xf32>
    %354 = arith.mulf %351, %337 : vector<8x32xf32>
    %355 = arith.mulf %350, %352 : vector<8x32xf32>
    %356 = arith.addf %354, %355 : vector<8x32xf32>
    %357 = math.tanh %356 : vector<8x32xf32>
    %358 = arith.mulf %353, %357 : vector<8x32xf32>
    %359 = arith.index_cast %c6_i32_120 : i32 to index
    %c0_126 = arith.constant 0 : index
    %c0_127 = arith.constant 0 : index
    %360 = vector.load %arg16[%359, %c0_126, %c0_127] : memref<8x8x32xf32, #tpu.memory_space<vmem>>, vector<1x8x32xf32>
    %361 = vector.shape_cast %360 : vector<1x8x32xf32> to vector<8x32xf32>
    %362 = vector.shape_cast %358 : vector<8x32xf32> to vector<1x8x32xf32>
    tpu.vector_store %arg16[%359, %c0_126, %c0_127], %362 {strides = array<i32>} : memref<8x8x32xf32, #tpu.memory_space<vmem>>, vector<1x8x32xf32>,
    %c7_i32_128 = arith.constant 7 : i32
    %363 = arith.index_cast %c7_i32_128 : i32 to index
    %c0_129 = arith.constant 0 : index
    %c0_130 = arith.constant 0 : index
    %364 = vector.load %arg2[%363, %c0_129, %c0_130] : memref<8x8x1xf32, #tpu.memory_space<vmem>>, vector<1x8x1xf32>
    %365 = vector.shape_cast %364 : vector<1x8x1xf32> to vector<8x1xf32>
    %366 = vector.broadcast %365 : vector<8x1xf32> to vector<8x32xf32>
    %367 = arith.mulf %358, %366 : vector<8x32xf32>
    %368 = vector.broadcast %365 : vector<8x1xf32> to vector<8x32xf32>
    %369 = arith.mulf %356, %368 : vector<8x32xf32>
    %370 = arith.index_cast %c7_i32_128 : i32 to index
    %c0_131 = arith.constant 0 : index
    %c0_132 = arith.constant 0 : index
    %371 = vector.load %arg15[%370, %c0_131, %c0_132] : memref<8x8x128xf32, #tpu.memory_space<vmem>>, vector<1x8x128xf32>
    %372 = vector.shape_cast %371 : vector<1x8x128xf32> to vector<8x128xf32>
    %cst_133 = arith.constant dense<0.000000e+00> : vector<8x128xf32>
    %373 = tpu.matmul %367, %124, %cst_133 {dimension_numbers = #tpu.dot_dimension_numbers<[1], [0], [0], [1], [0, 0, 1, 1], [], []>} : vector<8x32xf32>, vector<32x128xf32>, vector<8x128xf32> -> vector<8x128xf32>
    %374 = arith.addf %372, %373 : vector<8x128xf32>
    %375 = vector.broadcast %133 : vector<1x128xf32> to vector<8x128xf32>
    %376 = arith.mulf %374, %375 : vector<8x128xf32>
    %377 = math.tanh %376 : vector<8x128xf32>
    %378 = vector.broadcast %133 : vector<1x128xf32> to vector<8x128xf32>
    %379 = arith.mulf %377, %378 : vector<8x128xf32>
    %380 = vector.broadcast %136 : vector<1x128xf32> to vector<8x128xf32>
    %381 = arith.addf %379, %380 : vector<8x128xf32>
    %382 = vector.extract_strided_slice %381 {offsets = [0, 0], sizes = [8, 32], strides = [1, 1]} : vector<8x128xf32> to vector<8x32xf32>
    %383 = vector.extract_strided_slice %381 {offsets = [0, 32], sizes = [8, 32], strides = [1, 1]} : vector<8x128xf32> to vector<8x32xf32>
    %384 = vector.extract_strided_slice %381 {offsets = [0, 64], sizes = [8, 32], strides = [1, 1]} : vector<8x128xf32> to vector<8x32xf32>
    %385 = vector.extract_strided_slice %381 {offsets = [0, 96], sizes = [8, 32], strides = [1, 1]} : vector<8x128xf32> to vector<8x32xf32>
    %386 = arith.mulf %383, %369 : vector<8x32xf32>
    %387 = arith.mulf %382, %384 : vector<8x32xf32>
    %388 = arith.addf %386, %387 : vector<8x32xf32>
    %389 = math.tanh %388 : vector<8x32xf32>
    %390 = arith.mulf %385, %389 : vector<8x32xf32>
    %391 = arith.index_cast %c7_i32_128 : i32 to index
    %c0_134 = arith.constant 0 : index
    %c0_135 = arith.constant 0 : index
    %392 = vector.load %arg16[%391, %c0_134, %c0_135] : memref<8x8x32xf32, #tpu.memory_space<vmem>>, vector<1x8x32xf32>
    %393 = vector.shape_cast %392 : vector<1x8x32xf32> to vector<8x32xf32>
    %394 = vector.shape_cast %390 : vector<8x32xf32> to vector<1x8x32xf32>
    tpu.vector_store %arg16[%391, %c0_134, %c0_135], %394 {strides = array<i32>} : memref<8x8x32xf32, #tpu.memory_space<vmem>>, vector<1x8x32xf32>,
    %c8_i32_136 = arith.constant 8 : i32
    %c0_137 = arith.constant 0 : index
    %c0_138 = arith.constant 0 : index
    %395 = vector.load %arg13[%c0_137, %c0_138] : memref<8x32xf32, #tpu.memory_space<vmem>>, vector<8x32xf32>
    tpu.vector_store %arg13[%c0_137, %c0_138], %390 {strides = array<i32>} : memref<8x32xf32, #tpu.memory_space<vmem>>, vector<8x32xf32>,
    %c0_139 = arith.constant 0 : index
    %c0_140 = arith.constant 0 : index
    %396 = vector.load %arg14[%c0_139, %c0_140] : memref<8x32xf32, #tpu.memory_space<vmem>>, vector<8x32xf32>
    tpu.vector_store %arg14[%c0_139, %c0_140], %388 {strides = array<i32>} : memref<8x32xf32, #tpu.memory_space<vmem>>, vector<8x32xf32>,
    %c0_141 = arith.constant 0 : index
    %c0_142 = arith.constant 0 : index
    %397 = vector.load %arg10[%c0_141, %c0_142] : memref<32x128xf32, #tpu.memory_space<vmem>>, vector<32x128xf32>
    %c0_143 = arith.constant 0 : index
    %c0_144 = arith.constant 0 : index
    %398 = vector.load %arg11[%c0_143, %c0_144] : memref<1x128xf32, #tpu.memory_space<vmem>>, vector<1x128xf32>
    %399 = tpu.iota {dimensions = array<i32: 1>} : vector<8x128xi32>
    %c4_i32_145 = arith.constant 4 : i32
    %400 = vector.broadcast %c4_i32_145 : i32 to vector<8x128xi32>
    %401 = arith.cmpi slt, %399, %400 : vector<8x128xi32>
    %c4_i32_146 = arith.constant 4 : i32
    %402 = vector.broadcast %c4_i32_146 : i32 to vector<8x128xi32>
    %403 = arith.cmpi eq, %399, %402 : vector<8x128xi32>
    %cst_147 = arith.constant -1.000000e+30 : f32
    %c0_i32_148 = arith.constant 0 : i32
    %404 = arith.index_cast %c0_i32_148 : i32 to index
    %c0_149 = arith.constant 0 : index
    %c0_150 = arith.constant 0 : index
    %405 = vector.load %arg16[%404, %c0_149, %c0_150] : memref<8x8x32xf32, #tpu.memory_space<vmem>>, vector<1x8x32xf32>
    %406 = vector.shape_cast %405 : vector<1x8x32xf32> to vector<8x32xf32>
    %cst_151 = arith.constant dense<0.000000e+00> : vector<8x128xf32>
    %407 = tpu.matmul %406, %397, %cst_151 {dimension_numbers = #tpu.dot_dimension_numbers<[1], [0], [0], [1], [0, 0, 1, 1], [], []>} : vector<8x32xf32>, vector<32x128xf32>, vector<8x128xf32> -> vector<8x128xf32>
    %408 = vector.broadcast %398 : vector<1x128xf32> to vector<8x128xf32>
    %409 = arith.addf %407, %408 : vector<8x128xf32>
    %410 = vector.broadcast %cst_147 : f32 to vector<8x128xf32>
    %411 = arith.select %401, %409, %410 : vector<8x128xi1>, vector<8x128xf32>
    %cst_152 = arith.constant dense<0xFF800000> : vector<8xf32>
    %412 = vector.multi_reduction <maximumf>, %411, %cst_152 [1] : vector<8x128xf32> to vector<8xf32>
    %413 = vector.shape_cast %412 : vector<8xf32> to vector<8x1xf32>
    %414 = vector.broadcast %413 : vector<8x1xf32> to vector<8x128xf32>
    %415 = arith.subf %411, %414 : vector<8x128xf32>
    %416 = math.exp %415 : vector<8x128xf32>
    %cst_153 = arith.constant 0.000000e+00 : f32
    %417 = vector.broadcast %cst_153 : f32 to vector<8x128xf32>
    %418 = arith.select %401, %416, %417 : vector<8x128xi1>, vector<8x128xf32>
    %cst_154 = arith.constant dense<0.000000e+00> : vector<8xf32>
    %419 = vector.multi_reduction <add>, %418, %cst_154 [1] : vector<8x128xf32> to vector<8xf32>
    %420 = vector.shape_cast %419 : vector<8xf32> to vector<8x1xf32>
    %421 = vector.broadcast %420 : vector<8x1xf32> to vector<8x128xf32>
    %422 = arith.divf %418, %421 : vector<8x128xf32>
    %cst_155 = arith.constant 0.000000e+00 : f32
    %423 = vector.broadcast %cst_155 : f32 to vector<8x128xf32>
    %424 = arith.select %403, %409, %423 : vector<8x128xi1>, vector<8x128xf32>
    %425 = arith.select %401, %422, %424 : vector<8x128xi1>, vector<8x128xf32>
    %426 = arith.index_cast %c0_i32_148 : i32 to index
    %c0_156 = arith.constant 0 : index
    %c0_157 = arith.constant 0 : index
    %427 = vector.load %arg12[%426, %c0_156, %c0_157] : memref<8x8x128xf32, #tpu.memory_space<vmem>>, vector<1x8x128xf32>
    %428 = vector.shape_cast %427 : vector<1x8x128xf32> to vector<8x128xf32>
    %429 = vector.shape_cast %425 : vector<8x128xf32> to vector<1x8x128xf32>
    tpu.vector_store %arg12[%426, %c0_156, %c0_157], %429 {strides = array<i32>} : memref<8x8x128xf32, #tpu.memory_space<vmem>>, vector<1x8x128xf32>,
    %c1_i32_158 = arith.constant 1 : i32
    %430 = arith.index_cast %c1_i32_158 : i32 to index
    %c0_159 = arith.constant 0 : index
    %c0_160 = arith.constant 0 : index
    %431 = vector.load %arg16[%430, %c0_159, %c0_160] : memref<8x8x32xf32, #tpu.memory_space<vmem>>, vector<1x8x32xf32>
    %432 = vector.shape_cast %431 : vector<1x8x32xf32> to vector<8x32xf32>
    %cst_161 = arith.constant dense<0.000000e+00> : vector<8x128xf32>
    %433 = tpu.matmul %432, %397, %cst_161 {dimension_numbers = #tpu.dot_dimension_numbers<[1], [0], [0], [1], [0, 0, 1, 1], [], []>} : vector<8x32xf32>, vector<32x128xf32>, vector<8x128xf32> -> vector<8x128xf32>
    %434 = vector.broadcast %398 : vector<1x128xf32> to vector<8x128xf32>
    %435 = arith.addf %433, %434 : vector<8x128xf32>
    %436 = vector.broadcast %cst_147 : f32 to vector<8x128xf32>
    %437 = arith.select %401, %435, %436 : vector<8x128xi1>, vector<8x128xf32>
    %cst_162 = arith.constant dense<0xFF800000> : vector<8xf32>
    %438 = vector.multi_reduction <maximumf>, %437, %cst_162 [1] : vector<8x128xf32> to vector<8xf32>
    %439 = vector.shape_cast %438 : vector<8xf32> to vector<8x1xf32>
    %440 = vector.broadcast %439 : vector<8x1xf32> to vector<8x128xf32>
    %441 = arith.subf %437, %440 : vector<8x128xf32>
    %442 = math.exp %441 : vector<8x128xf32>
    %cst_163 = arith.constant 0.000000e+00 : f32
    %443 = vector.broadcast %cst_163 : f32 to vector<8x128xf32>
    %444 = arith.select %401, %442, %443 : vector<8x128xi1>, vector<8x128xf32>
    %cst_164 = arith.constant dense<0.000000e+00> : vector<8xf32>
    %445 = vector.multi_reduction <add>, %444, %cst_164 [1] : vector<8x128xf32> to vector<8xf32>
    %446 = vector.shape_cast %445 : vector<8xf32> to vector<8x1xf32>
    %447 = vector.broadcast %446 : vector<8x1xf32> to vector<8x128xf32>
    %448 = arith.divf %444, %447 : vector<8x128xf32>
    %cst_165 = arith.constant 0.000000e+00 : f32
    %449 = vector.broadcast %cst_165 : f32 to vector<8x128xf32>
    %450 = arith.select %403, %435, %449 : vector<8x128xi1>, vector<8x128xf32>
    %451 = arith.select %401, %448, %450 : vector<8x128xi1>, vector<8x128xf32>
    %452 = arith.index_cast %c1_i32_158 : i32 to index
    %c0_166 = arith.constant 0 : index
    %c0_167 = arith.constant 0 : index
    %453 = vector.load %arg12[%452, %c0_166, %c0_167] : memref<8x8x128xf32, #tpu.memory_space<vmem>>, vector<1x8x128xf32>
    %454 = vector.shape_cast %453 : vector<1x8x128xf32> to vector<8x128xf32>
    %455 = vector.shape_cast %451 : vector<8x128xf32> to vector<1x8x128xf32>
    tpu.vector_store %arg12[%452, %c0_166, %c0_167], %455 {strides = array<i32>} : memref<8x8x128xf32, #tpu.memory_space<vmem>>, vector<1x8x128xf32>,
    %c2_i32_168 = arith.constant 2 : i32
    %456 = arith.index_cast %c2_i32_168 : i32 to index
    %c0_169 = arith.constant 0 : index
    %c0_170 = arith.constant 0 : index
    %457 = vector.load %arg16[%456, %c0_169, %c0_170] : memref<8x8x32xf32, #tpu.memory_space<vmem>>, vector<1x8x32xf32>
    %458 = vector.shape_cast %457 : vector<1x8x32xf32> to vector<8x32xf32>
    %cst_171 = arith.constant dense<0.000000e+00> : vector<8x128xf32>
    %459 = tpu.matmul %458, %397, %cst_171 {dimension_numbers = #tpu.dot_dimension_numbers<[1], [0], [0], [1], [0, 0, 1, 1], [], []>} : vector<8x32xf32>, vector<32x128xf32>, vector<8x128xf32> -> vector<8x128xf32>
    %460 = vector.broadcast %398 : vector<1x128xf32> to vector<8x128xf32>
    %461 = arith.addf %459, %460 : vector<8x128xf32>
    %462 = vector.broadcast %cst_147 : f32 to vector<8x128xf32>
    %463 = arith.select %401, %461, %462 : vector<8x128xi1>, vector<8x128xf32>
    %cst_172 = arith.constant dense<0xFF800000> : vector<8xf32>
    %464 = vector.multi_reduction <maximumf>, %463, %cst_172 [1] : vector<8x128xf32> to vector<8xf32>
    %465 = vector.shape_cast %464 : vector<8xf32> to vector<8x1xf32>
    %466 = vector.broadcast %465 : vector<8x1xf32> to vector<8x128xf32>
    %467 = arith.subf %463, %466 : vector<8x128xf32>
    %468 = math.exp %467 : vector<8x128xf32>
    %cst_173 = arith.constant 0.000000e+00 : f32
    %469 = vector.broadcast %cst_173 : f32 to vector<8x128xf32>
    %470 = arith.select %401, %468, %469 : vector<8x128xi1>, vector<8x128xf32>
    %cst_174 = arith.constant dense<0.000000e+00> : vector<8xf32>
    %471 = vector.multi_reduction <add>, %470, %cst_174 [1] : vector<8x128xf32> to vector<8xf32>
    %472 = vector.shape_cast %471 : vector<8xf32> to vector<8x1xf32>
    %473 = vector.broadcast %472 : vector<8x1xf32> to vector<8x128xf32>
    %474 = arith.divf %470, %473 : vector<8x128xf32>
    %cst_175 = arith.constant 0.000000e+00 : f32
    %475 = vector.broadcast %cst_175 : f32 to vector<8x128xf32>
    %476 = arith.select %403, %461, %475 : vector<8x128xi1>, vector<8x128xf32>
    %477 = arith.select %401, %474, %476 : vector<8x128xi1>, vector<8x128xf32>
    %478 = arith.index_cast %c2_i32_168 : i32 to index
    %c0_176 = arith.constant 0 : index
    %c0_177 = arith.constant 0 : index
    %479 = vector.load %arg12[%478, %c0_176, %c0_177] : memref<8x8x128xf32, #tpu.memory_space<vmem>>, vector<1x8x128xf32>
    %480 = vector.shape_cast %479 : vector<1x8x128xf32> to vector<8x128xf32>
    %481 = vector.shape_cast %477 : vector<8x128xf32> to vector<1x8x128xf32>
    tpu.vector_store %arg12[%478, %c0_176, %c0_177], %481 {strides = array<i32>} : memref<8x8x128xf32, #tpu.memory_space<vmem>>, vector<1x8x128xf32>,
    %c3_i32_178 = arith.constant 3 : i32
    %482 = arith.index_cast %c3_i32_178 : i32 to index
    %c0_179 = arith.constant 0 : index
    %c0_180 = arith.constant 0 : index
    %483 = vector.load %arg16[%482, %c0_179, %c0_180] : memref<8x8x32xf32, #tpu.memory_space<vmem>>, vector<1x8x32xf32>
    %484 = vector.shape_cast %483 : vector<1x8x32xf32> to vector<8x32xf32>
    %cst_181 = arith.constant dense<0.000000e+00> : vector<8x128xf32>
    %485 = tpu.matmul %484, %397, %cst_181 {dimension_numbers = #tpu.dot_dimension_numbers<[1], [0], [0], [1], [0, 0, 1, 1], [], []>} : vector<8x32xf32>, vector<32x128xf32>, vector<8x128xf32> -> vector<8x128xf32>
    %486 = vector.broadcast %398 : vector<1x128xf32> to vector<8x128xf32>
    %487 = arith.addf %485, %486 : vector<8x128xf32>
    %488 = vector.broadcast %cst_147 : f32 to vector<8x128xf32>
    %489 = arith.select %401, %487, %488 : vector<8x128xi1>, vector<8x128xf32>
    %cst_182 = arith.constant dense<0xFF800000> : vector<8xf32>
    %490 = vector.multi_reduction <maximumf>, %489, %cst_182 [1] : vector<8x128xf32> to vector<8xf32>
    %491 = vector.shape_cast %490 : vector<8xf32> to vector<8x1xf32>
    %492 = vector.broadcast %491 : vector<8x1xf32> to vector<8x128xf32>
    %493 = arith.subf %489, %492 : vector<8x128xf32>
    %494 = math.exp %493 : vector<8x128xf32>
    %cst_183 = arith.constant 0.000000e+00 : f32
    %495 = vector.broadcast %cst_183 : f32 to vector<8x128xf32>
    %496 = arith.select %401, %494, %495 : vector<8x128xi1>, vector<8x128xf32>
    %cst_184 = arith.constant dense<0.000000e+00> : vector<8xf32>
    %497 = vector.multi_reduction <add>, %496, %cst_184 [1] : vector<8x128xf32> to vector<8xf32>
    %498 = vector.shape_cast %497 : vector<8xf32> to vector<8x1xf32>
    %499 = vector.broadcast %498 : vector<8x1xf32> to vector<8x128xf32>
    %500 = arith.divf %496, %499 : vector<8x128xf32>
    %cst_185 = arith.constant 0.000000e+00 : f32
    %501 = vector.broadcast %cst_185 : f32 to vector<8x128xf32>
    %502 = arith.select %403, %487, %501 : vector<8x128xi1>, vector<8x128xf32>
    %503 = arith.select %401, %500, %502 : vector<8x128xi1>, vector<8x128xf32>
    %504 = arith.index_cast %c3_i32_178 : i32 to index
    %c0_186 = arith.constant 0 : index
    %c0_187 = arith.constant 0 : index
    %505 = vector.load %arg12[%504, %c0_186, %c0_187] : memref<8x8x128xf32, #tpu.memory_space<vmem>>, vector<1x8x128xf32>
    %506 = vector.shape_cast %505 : vector<1x8x128xf32> to vector<8x128xf32>
    %507 = vector.shape_cast %503 : vector<8x128xf32> to vector<1x8x128xf32>
    tpu.vector_store %arg12[%504, %c0_186, %c0_187], %507 {strides = array<i32>} : memref<8x8x128xf32, #tpu.memory_space<vmem>>, vector<1x8x128xf32>,
    %c4_i32_188 = arith.constant 4 : i32
    %508 = arith.index_cast %c4_i32_188 : i32 to index
    %c0_189 = arith.constant 0 : index
    %c0_190 = arith.constant 0 : index
    %509 = vector.load %arg16[%508, %c0_189, %c0_190] : memref<8x8x32xf32, #tpu.memory_space<vmem>>, vector<1x8x32xf32>
    %510 = vector.shape_cast %509 : vector<1x8x32xf32> to vector<8x32xf32>
    %cst_191 = arith.constant dense<0.000000e+00> : vector<8x128xf32>
    %511 = tpu.matmul %510, %397, %cst_191 {dimension_numbers = #tpu.dot_dimension_numbers<[1], [0], [0], [1], [0, 0, 1, 1], [], []>} : vector<8x32xf32>, vector<32x128xf32>, vector<8x128xf32> -> vector<8x128xf32>
    %512 = vector.broadcast %398 : vector<1x128xf32> to vector<8x128xf32>
    %513 = arith.addf %511, %512 : vector<8x128xf32>
    %514 = vector.broadcast %cst_147 : f32 to vector<8x128xf32>
    %515 = arith.select %401, %513, %514 : vector<8x128xi1>, vector<8x128xf32>
    %cst_192 = arith.constant dense<0xFF800000> : vector<8xf32>
    %516 = vector.multi_reduction <maximumf>, %515, %cst_192 [1] : vector<8x128xf32> to vector<8xf32>
    %517 = vector.shape_cast %516 : vector<8xf32> to vector<8x1xf32>
    %518 = vector.broadcast %517 : vector<8x1xf32> to vector<8x128xf32>
    %519 = arith.subf %515, %518 : vector<8x128xf32>
    %520 = math.exp %519 : vector<8x128xf32>
    %cst_193 = arith.constant 0.000000e+00 : f32
    %521 = vector.broadcast %cst_193 : f32 to vector<8x128xf32>
    %522 = arith.select %401, %520, %521 : vector<8x128xi1>, vector<8x128xf32>
    %cst_194 = arith.constant dense<0.000000e+00> : vector<8xf32>
    %523 = vector.multi_reduction <add>, %522, %cst_194 [1] : vector<8x128xf32> to vector<8xf32>
    %524 = vector.shape_cast %523 : vector<8xf32> to vector<8x1xf32>
    %525 = vector.broadcast %524 : vector<8x1xf32> to vector<8x128xf32>
    %526 = arith.divf %522, %525 : vector<8x128xf32>
    %cst_195 = arith.constant 0.000000e+00 : f32
    %527 = vector.broadcast %cst_195 : f32 to vector<8x128xf32>
    %528 = arith.select %403, %513, %527 : vector<8x128xi1>, vector<8x128xf32>
    %529 = arith.select %401, %526, %528 : vector<8x128xi1>, vector<8x128xf32>
    %530 = arith.index_cast %c4_i32_188 : i32 to index
    %c0_196 = arith.constant 0 : index
    %c0_197 = arith.constant 0 : index
    %531 = vector.load %arg12[%530, %c0_196, %c0_197] : memref<8x8x128xf32, #tpu.memory_space<vmem>>, vector<1x8x128xf32>
    %532 = vector.shape_cast %531 : vector<1x8x128xf32> to vector<8x128xf32>
    %533 = vector.shape_cast %529 : vector<8x128xf32> to vector<1x8x128xf32>
    tpu.vector_store %arg12[%530, %c0_196, %c0_197], %533 {strides = array<i32>} : memref<8x8x128xf32, #tpu.memory_space<vmem>>, vector<1x8x128xf32>,
    %c5_i32_198 = arith.constant 5 : i32
    %534 = arith.index_cast %c5_i32_198 : i32 to index
    %c0_199 = arith.constant 0 : index
    %c0_200 = arith.constant 0 : index
    %535 = vector.load %arg16[%534, %c0_199, %c0_200] : memref<8x8x32xf32, #tpu.memory_space<vmem>>, vector<1x8x32xf32>
    %536 = vector.shape_cast %535 : vector<1x8x32xf32> to vector<8x32xf32>
    %cst_201 = arith.constant dense<0.000000e+00> : vector<8x128xf32>
    %537 = tpu.matmul %536, %397, %cst_201 {dimension_numbers = #tpu.dot_dimension_numbers<[1], [0], [0], [1], [0, 0, 1, 1], [], []>} : vector<8x32xf32>, vector<32x128xf32>, vector<8x128xf32> -> vector<8x128xf32>
    %538 = vector.broadcast %398 : vector<1x128xf32> to vector<8x128xf32>
    %539 = arith.addf %537, %538 : vector<8x128xf32>
    %540 = vector.broadcast %cst_147 : f32 to vector<8x128xf32>
    %541 = arith.select %401, %539, %540 : vector<8x128xi1>, vector<8x128xf32>
    %cst_202 = arith.constant dense<0xFF800000> : vector<8xf32>
    %542 = vector.multi_reduction <maximumf>, %541, %cst_202 [1] : vector<8x128xf32> to vector<8xf32>
    %543 = vector.shape_cast %542 : vector<8xf32> to vector<8x1xf32>
    %544 = vector.broadcast %543 : vector<8x1xf32> to vector<8x128xf32>
    %545 = arith.subf %541, %544 : vector<8x128xf32>
    %546 = math.exp %545 : vector<8x128xf32>
    %cst_203 = arith.constant 0.000000e+00 : f32
    %547 = vector.broadcast %cst_203 : f32 to vector<8x128xf32>
    %548 = arith.select %401, %546, %547 : vector<8x128xi1>, vector<8x128xf32>
    %cst_204 = arith.constant dense<0.000000e+00> : vector<8xf32>
    %549 = vector.multi_reduction <add>, %548, %cst_204 [1] : vector<8x128xf32> to vector<8xf32>
    %550 = vector.shape_cast %549 : vector<8xf32> to vector<8x1xf32>
    %551 = vector.broadcast %550 : vector<8x1xf32> to vector<8x128xf32>
    %552 = arith.divf %548, %551 : vector<8x128xf32>
    %cst_205 = arith.constant 0.000000e+00 : f32
    %553 = vector.broadcast %cst_205 : f32 to vector<8x128xf32>
    %554 = arith.select %403, %539, %553 : vector<8x128xi1>, vector<8x128xf32>
    %555 = arith.select %401, %552, %554 : vector<8x128xi1>, vector<8x128xf32>
    %556 = arith.index_cast %c5_i32_198 : i32 to index
    %c0_206 = arith.constant 0 : index
    %c0_207 = arith.constant 0 : index
    %557 = vector.load %arg12[%556, %c0_206, %c0_207] : memref<8x8x128xf32, #tpu.memory_space<vmem>>, vector<1x8x128xf32>
    %558 = vector.shape_cast %557 : vector<1x8x128xf32> to vector<8x128xf32>
    %559 = vector.shape_cast %555 : vector<8x128xf32> to vector<1x8x128xf32>
    tpu.vector_store %arg12[%556, %c0_206, %c0_207], %559 {strides = array<i32>} : memref<8x8x128xf32, #tpu.memory_space<vmem>>, vector<1x8x128xf32>,
    %c6_i32_208 = arith.constant 6 : i32
    %560 = arith.index_cast %c6_i32_208 : i32 to index
    %c0_209 = arith.constant 0 : index
    %c0_210 = arith.constant 0 : index
    %561 = vector.load %arg16[%560, %c0_209, %c0_210] : memref<8x8x32xf32, #tpu.memory_space<vmem>>, vector<1x8x32xf32>
    %562 = vector.shape_cast %561 : vector<1x8x32xf32> to vector<8x32xf32>
    %cst_211 = arith.constant dense<0.000000e+00> : vector<8x128xf32>
    %563 = tpu.matmul %562, %397, %cst_211 {dimension_numbers = #tpu.dot_dimension_numbers<[1], [0], [0], [1], [0, 0, 1, 1], [], []>} : vector<8x32xf32>, vector<32x128xf32>, vector<8x128xf32> -> vector<8x128xf32>
    %564 = vector.broadcast %398 : vector<1x128xf32> to vector<8x128xf32>
    %565 = arith.addf %563, %564 : vector<8x128xf32>
    %566 = vector.broadcast %cst_147 : f32 to vector<8x128xf32>
    %567 = arith.select %401, %565, %566 : vector<8x128xi1>, vector<8x128xf32>
    %cst_212 = arith.constant dense<0xFF800000> : vector<8xf32>
    %568 = vector.multi_reduction <maximumf>, %567, %cst_212 [1] : vector<8x128xf32> to vector<8xf32>
    %569 = vector.shape_cast %568 : vector<8xf32> to vector<8x1xf32>
    %570 = vector.broadcast %569 : vector<8x1xf32> to vector<8x128xf32>
    %571 = arith.subf %567, %570 : vector<8x128xf32>
    %572 = math.exp %571 : vector<8x128xf32>
    %cst_213 = arith.constant 0.000000e+00 : f32
    %573 = vector.broadcast %cst_213 : f32 to vector<8x128xf32>
    %574 = arith.select %401, %572, %573 : vector<8x128xi1>, vector<8x128xf32>
    %cst_214 = arith.constant dense<0.000000e+00> : vector<8xf32>
    %575 = vector.multi_reduction <add>, %574, %cst_214 [1] : vector<8x128xf32> to vector<8xf32>
    %576 = vector.shape_cast %575 : vector<8xf32> to vector<8x1xf32>
    %577 = vector.broadcast %576 : vector<8x1xf32> to vector<8x128xf32>
    %578 = arith.divf %574, %577 : vector<8x128xf32>
    %cst_215 = arith.constant 0.000000e+00 : f32
    %579 = vector.broadcast %cst_215 : f32 to vector<8x128xf32>
    %580 = arith.select %403, %565, %579 : vector<8x128xi1>, vector<8x128xf32>
    %581 = arith.select %401, %578, %580 : vector<8x128xi1>, vector<8x128xf32>
    %582 = arith.index_cast %c6_i32_208 : i32 to index
    %c0_216 = arith.constant 0 : index
    %c0_217 = arith.constant 0 : index
    %583 = vector.load %arg12[%582, %c0_216, %c0_217] : memref<8x8x128xf32, #tpu.memory_space<vmem>>, vector<1x8x128xf32>
    %584 = vector.shape_cast %583 : vector<1x8x128xf32> to vector<8x128xf32>
    %585 = vector.shape_cast %581 : vector<8x128xf32> to vector<1x8x128xf32>
    tpu.vector_store %arg12[%582, %c0_216, %c0_217], %585 {strides = array<i32>} : memref<8x8x128xf32, #tpu.memory_space<vmem>>, vector<1x8x128xf32>,
    %c7_i32_218 = arith.constant 7 : i32
    %586 = arith.index_cast %c7_i32_218 : i32 to index
    %c0_219 = arith.constant 0 : index
    %c0_220 = arith.constant 0 : index
    %587 = vector.load %arg16[%586, %c0_219, %c0_220] : memref<8x8x32xf32, #tpu.memory_space<vmem>>, vector<1x8x32xf32>
    %588 = vector.shape_cast %587 : vector<1x8x32xf32> to vector<8x32xf32>
    %cst_221 = arith.constant dense<0.000000e+00> : vector<8x128xf32>
    %589 = tpu.matmul %588, %397, %cst_221 {dimension_numbers = #tpu.dot_dimension_numbers<[1], [0], [0], [1], [0, 0, 1, 1], [], []>} : vector<8x32xf32>, vector<32x128xf32>, vector<8x128xf32> -> vector<8x128xf32>
    %590 = vector.broadcast %398 : vector<1x128xf32> to vector<8x128xf32>
    %591 = arith.addf %589, %590 : vector<8x128xf32>
    %592 = vector.broadcast %cst_147 : f32 to vector<8x128xf32>
    %593 = arith.select %401, %591, %592 : vector<8x128xi1>, vector<8x128xf32>
    %cst_222 = arith.constant dense<0xFF800000> : vector<8xf32>
    %594 = vector.multi_reduction <maximumf>, %593, %cst_222 [1] : vector<8x128xf32> to vector<8xf32>
    %595 = vector.shape_cast %594 : vector<8xf32> to vector<8x1xf32>
    %596 = vector.broadcast %595 : vector<8x1xf32> to vector<8x128xf32>
    %597 = arith.subf %593, %596 : vector<8x128xf32>
    %598 = math.exp %597 : vector<8x128xf32>
    %cst_223 = arith.constant 0.000000e+00 : f32
    %599 = vector.broadcast %cst_223 : f32 to vector<8x128xf32>
    %600 = arith.select %401, %598, %599 : vector<8x128xi1>, vector<8x128xf32>
    %cst_224 = arith.constant dense<0.000000e+00> : vector<8xf32>
    %601 = vector.multi_reduction <add>, %600, %cst_224 [1] : vector<8x128xf32> to vector<8xf32>
    %602 = vector.shape_cast %601 : vector<8xf32> to vector<8x1xf32>
    %603 = vector.broadcast %602 : vector<8x1xf32> to vector<8x128xf32>
    %604 = arith.divf %600, %603 : vector<8x128xf32>
    %cst_225 = arith.constant 0.000000e+00 : f32
    %605 = vector.broadcast %cst_225 : f32 to vector<8x128xf32>
    %606 = arith.select %403, %591, %605 : vector<8x128xi1>, vector<8x128xf32>
    %607 = arith.select %401, %604, %606 : vector<8x128xi1>, vector<8x128xf32>
    %608 = arith.index_cast %c7_i32_218 : i32 to index
    %c0_226 = arith.constant 0 : index
    %c0_227 = arith.constant 0 : index
    %609 = vector.load %arg12[%608, %c0_226, %c0_227] : memref<8x8x128xf32, #tpu.memory_space<vmem>>, vector<1x8x128xf32>
    %610 = vector.shape_cast %609 : vector<1x8x128xf32> to vector<8x128xf32>
    %611 = vector.shape_cast %607 : vector<8x128xf32> to vector<1x8x128xf32>
    tpu.vector_store %arg12[%608, %c0_226, %c0_227], %611 {strides = array<i32>} : memref<8x8x128xf32, #tpu.memory_space<vmem>>, vector<1x8x128xf32>,
    %c8_i32_228 = arith.constant 8 : i32
    return
  }
  func.func @transform_0(%arg0: i32) -> (i32, i32, i32) {
    %c0_i32 = arith.constant 0 : i32
    %c0_i32_0 = arith.constant 0 : i32
    %c0_i32_1 = arith.constant 0 : i32
    return %c0_i32, %arg0, %c0_i32_0 : i32, i32, i32
  }
  func.func @transform_1(%arg0: i32) -> (i32, i32, i32) {
    %c0_i32 = arith.constant 0 : i32
    %c0_i32_0 = arith.constant 0 : i32
    %c0_i32_1 = arith.constant 0 : i32
    return %c0_i32, %arg0, %c0_i32_0 : i32, i32, i32
  }
  func.func @transform_2(%arg0: i32) -> (i32, i32) {
    %c0_i32 = arith.constant 0 : i32
    %c0_i32_0 = arith.constant 0 : i32
    return %arg0, %c0_i32 : i32, i32
  }
  func.func @transform_3(%arg0: i32) -> (i32, i32) {
    %c0_i32 = arith.constant 0 : i32
    %c0_i32_0 = arith.constant 0 : i32
    return %arg0, %c0_i32 : i32, i32
  }
  func.func @transform_4(%arg0: i32) -> (i32, i32) {
    %c0_i32 = arith.constant 0 : i32
    %c0_i32_0 = arith.constant 0 : i32
    %c0_i32_1 = arith.constant 0 : i32
    return %c0_i32, %c0_i32_0 : i32, i32
  }
  func.func @transform_5(%arg0: i32) -> (i32, i32) {
    %c0_i32 = arith.constant 0 : i32
    %c0_i32_0 = arith.constant 0 : i32
    %c0_i32_1 = arith.constant 0 : i32
    return %c0_i32, %c0_i32_0 : i32, i32
  }
  func.func @transform_6(%arg0: i32) -> (i32, i32) {
    %c0_i32 = arith.constant 0 : i32
    %c0_i32_0 = arith.constant 0 : i32
    %c0_i32_1 = arith.constant 0 : i32
    return %c0_i32, %c0_i32_0 : i32, i32
  }
  func.func @transform_7(%arg0: i32) -> (i32, i32) {
    %c0_i32 = arith.constant 0 : i32
    %c0_i32_0 = arith.constant 0 : i32
    %c0_i32_1 = arith.constant 0 : i32
    return %c0_i32, %c0_i32_0 : i32, i32
  }
  func.func @transform_8(%arg0: i32) -> (i32, i32) {
    %c0_i32 = arith.constant 0 : i32
    %c0_i32_0 = arith.constant 0 : i32
    %c0_i32_1 = arith.constant 0 : i32
    return %c0_i32, %c0_i32_0 : i32, i32
  }
  func.func @transform_9(%arg0: i32) -> (i32, i32) {
    %c0_i32 = arith.constant 0 : i32
    %c0_i32_0 = arith.constant 0 : i32
    %c0_i32_1 = arith.constant 0 : i32
    return %c0_i32, %c0_i32_0 : i32, i32
  }
  func.func @transform_10(%arg0: i32) -> (i32, i32) {
    %c0_i32 = arith.constant 0 : i32
    %c0_i32_0 = arith.constant 0 : i32
    %c0_i32_1 = arith.constant 0 : i32
    return %c0_i32, %c0_i32_0 : i32, i32
  }
  func.func @transform_11(%arg0: i32) -> (i32, i32, i32) {
    %c0_i32 = arith.constant 0 : i32
    %c0_i32_0 = arith.constant 0 : i32
    %c0_i32_1 = arith.constant 0 : i32
    return %c0_i32, %arg0, %c0_i32_0 : i32, i32, i32
  }
  func.func @transform_12(%arg0: i32) -> (i32, i32) {
    %c0_i32 = arith.constant 0 : i32
    %c0_i32_0 = arith.constant 0 : i32
    return %arg0, %c0_i32 : i32, i32
  }
  func.func @transform_13(%arg0: i32) -> (i32, i32) {
    %c0_i32 = arith.constant 0 : i32
    %c0_i32_0 = arith.constant 0 : i32
    return %arg0, %c0_i32 : i32, i32
  }
}

</mosaic_0001>

<bundles_post_ra>
// kernel: tpu_custom_call.1
= control target key start
LH: loop header
LB: loop body
LE: loop exit
PB: predicated region body
PF: predicated region fallthrough
CT: control target
= control target key end

     0   :  { %19 = vsyncpa [#allocation5], 0  ;;  %s2533_s0 = inlined_call_operand.vmem [shape: f32[8,8,16], index: 0, kind: input, shape index: {}]   ;;  %s2534_s1 = inlined_call_operand.vmem [shape: f32[8,8,1], index: 1, kind: input, shape index: {}]   ;;  %s2535_s2 = inlined_call_operand.vmem [shape: f32[8,32], index: 2, kind: input, shape index: {}]   ;;  %s2536_s3 = inlined_call_operand.hbm [shape: f32[8,32], index: 3, kind: input, shape index: {}]   ;;  %s2537_s4 = inlined_call_operand.hbm [shape: f32[16,32], index: 4, kind: input, shape index: {}]   ;;  %s2538_s5 = inlined_call_operand.vmem [shape: f32[1,32], index: 5, kind: input, shape index: {}]   ;;  %s2539_s6 = inlined_call_operand.hbm [shape: f32[32,128], index: 6, kind: input, shape index: {}]   ;;  %s2540_s7 = inlined_call_operand.hbm [shape: f32[32,128], index: 7, kind: input, shape index: {}]   ;;  %s2541_s8 = inlined_call_operand.vmem [shape: f32[1,128], index: 8, kind: input, shape index: {}]   ;;  %s2542_s9 = inlined_call_operand.hbm [shape: f32[32,128], index: 9, kind: input, shape index: {}]   ;;  %s2543_s10 = inlined_call_operand.vmem [shape: f32[1,128], index: 10, kind: input, shape index: {}]   ;;  %s2544_s11 = inlined_call_operand.hbm [shape: f32[8,8,128], index: 11, kind: output, shape index: {0}]   ;;  %s2545_s12 = inlined_call_operand.hbm [shape: f32[8,32], index: 12, kind: output, shape index: {1}]   ;;  %s2546_s13 = inlined_call_operand.hbm [shape: f32[8,32], index: 13, kind: output, shape index: {2}]  }
   0x1   :  { %20 = vsyncpa [#allocation8], 0 }
   0x2   :  { %21 = vsyncpa [#allocation11], 0 }
   0x3   :  { %22 = vsyncpa [#allocation6], 0  ;;  %s45_s27 = sshll.u32 %s2537_s4, 4  ;;  %s46_s27 = int_to_ptr.hbm [resolvable:$true] %s45_s27 }
   0x4   :  { %23 = vsyncpa [#allocation15], 0  ;;  %s1874_s28 = smov [#allocation7]   ;;  %s73_s15 = sshll.u32 %s2540_s7, 4  ;;  %s74_s15 = int_to_ptr.hbm [resolvable:$true] %s73_s15 }
   0x5   :  { %s47_s29 = sshll.u32 %s1874_s28, 4  ;;  %s1875_s16 = smov 128   ;;  %s48_s29 = int_to_ptr.vmem [resolvable:$true] %s47_s29 }
   0x6   :  { %s1876_s17 = smov 8   ;;  %s1877_s18 = smov [#allocation10]  }
   0x7   :  { %53 = dma.hbm_to_vmem [thread:$0]  %s46_s27, 256, %s48_s29, [#allocation8], %s1875_s16, %s1875_s16, %s1876_s17  }
   0x8   :  { %s75_s19 = sshll.u32 %s1877_s18, 4  ;;  %s35_s21 = sshll.u32 %s2536_s3, 4  ;;  %s76_s19 = int_to_ptr.vmem [resolvable:$true] %s75_s19  ;;  %s36_s21 = int_to_ptr.hbm [resolvable:$true] %s35_s21 }
   0x9   :  { %81 = dma.hbm_to_vmem [thread:$0]  %s74_s15, 512, %s76_s19, [#allocation11], %s1875_s16, %s1875_s16, %s1876_s17  }
   0xa   :  { %s60_s23 = sshll.u32 %s2539_s6, 4  ;;  %s1878_s24 = smov [#allocation4]   ;;  %s61_s23 = int_to_ptr.hbm [resolvable:$true] %s60_s23 }
   0xb   :  { %s37_s25 = sshll.u32 %s1878_s24, 4  ;;  %s1879_s26 = smov [#allocation9]   ;;  %s38_s25 = int_to_ptr.vmem [resolvable:$true] %s37_s25 }
   0xc   :  { %40 = dma.hbm_to_vmem [thread:$0]  %s36_s21, 128, %s38_s25, [#allocation5]  }
   0xd   :  { %s62_s27 = sshll.u32 %s1879_s26, 4  ;;  %s88_s3 = sshll.u32 %s2542_s9, 4  ;;  %s63_s27 = int_to_ptr.vmem [resolvable:$true] %s62_s27  ;;  %s89_s3 = int_to_ptr.hbm [resolvable:$true] %s88_s3 }
   0xe   :  { %68 = dma.hbm_to_vmem [thread:$0]  %s61_s23, 512, %s63_s27, [#allocation8], %s1875_s16, %s1875_s16, %s1876_s17  }
   0xf   :  { %s1880_s30 = smov [#allocation12]  }
  0x10   :  { %s90_s14 = sshll.u32 %s1880_s30, 4  ;;  %s91_s14 = int_to_ptr.vmem [resolvable:$true] %s90_s14 }
  0x11   :  { %96 = dma.hbm_to_vmem [thread:$0]  %s89_s3, 512, %s91_s14, [#allocation11], %s1875_s16, %s1875_s16, %s1876_s17  }
  0x12   :  { %1864 = dma.done.wait [#allocation5], 128  }
  0x13   :  { %1865 = vsyncadd [#allocation5], 4294967168 }
  0x14   :  { %1866 = dma.done.wait [#allocation8], 768  }
  0x15   :  { %1867 = vsyncadd [#allocation8], 4294966528 }
  0x16   :  { %1868 = dma.done.wait [#allocation11], 1024  }
  0x17   :  { %1869 = vsyncadd [#allocation11], 4294966272  ;;  %v1881_v0 = vmov 0   ;;  %v1986_v1 = vld [vmem:[#allocation7 + $0x8] sm:$0xff]  ;;  %v1988_v2 = vld [vmem:[#allocation7] sm:$0xff]  ;;  %vm131_vm0 = vcmask 130048   ;;  %v545_v37 = vlaneseq }
  0x18   :  { %1602 = vset.pattern.permute.xlu0 %v1881_v0  ;;  %1603 = vset.pattern.permute.xlu2 %v1881_v0  ;;  %v127_v3 = vld [vmem:[%s2533_s0] sm:$0xff]  ;;  %v1998_v5 = vld [vmem:[#allocation9 + $0x18] sm:$0xff]  ;;  %v2027_v10 = vld [vmem:[#allocation9 + $0x10] sm:$0xff]  ;;  %vm159_vm1 = vcmask 261120   ;;  %s1882_s27 = smov 32   ;;  %v1883_v44 = vmov 0.5  }
  0x19   :  { %1604 = vset.pattern.permute.xlu1 %v1881_v0  ;;  %149 = vmatpush.msra.mxu0 %v1986_v1  ;;  %v554_v4 = vld [vmem:[%s2534_s1] sm:$0xff]  ;;  %v1546_v6 = vld [vmem:[%s2533_s0 + $0x10] sm:$0xff]  ;;  %v2031_v11 = vld [vmem:[#allocation10 + $0x10] sm:$0xff]  ;;  %v2103_v39 = vand.u32 127, %v545_v37  ;;  %s1886_s3 = smov [#allocation14]   ;;  %s1520_s15 = sshll.u32 %s2546_s13, 4  ;;  %s1521_s15 = int_to_ptr.hbm [resolvable:$true] %s1520_s15 }
  0x1a   :  { %203 = vmatpush.msra.mxu2 %v1986_v1  ;;  %557 = vperm.xlu0 %1602, %v554_v4   ;;  %v1552_v7 = vld [vmem:[%s2533_s0 + $0x20] sm:$0xff]  ;;  %v2019_v8 = vld [vmem:[#allocation10 + $0x18] sm:$0xff]  ;;  %v2040_v14 = vld [vmem:[#allocation9] sm:$0xff]  ;;  %s1507_s30 = sshll.u32 %s1886_s3, 4  ;;  %s1888_s13 = smov [#allocation13]   ;;  %s1508_s30 = int_to_ptr.vmem [resolvable:$true] %s1507_s30 }
  0x1b   :  { %150 = vmatpush.msra.mxu0 %v1988_v2  ;;  %175 = vmatpush.msra.mxu1 %v1998_v5  ;;  %v1558_v9 = vld [vmem:[%s2533_s0 + $0x30] sm:$0xff]  ;;  %v2033_v12 = vld [vmem:[#allocation9 + $0x8] sm:$0xff]  ;;  %v2046_v15 = vld [vmem:[#allocation10] sm:$0xff]  ;;  %vm547_vm2 = vcmp.ge.s32.totalorder %v2103_v39, 64  ;;  %vm548_vm3 = vcmp.lt.s32.totalorder %v2103_v39, 96  ;;  %vm1069_vm5 = vcmp.lt.s32.totalorder %v2103_v39, 4 }
  0x1c   :  { %1541 = vmatmul.msk.f32.vlgmr.msra.gmra.mxu0 %vm131_vm0, %v127_v3  ;;  %204 = vmatpush.msra.mxu2 %v1988_v2  ;;  %v2038_v13 = vld [vmem:[#allocation10 + $0x8] sm:$0xff]  ;;  %v1543_v16 = vld [vmem:[%s2533_s0 + $0x8] sm:$0xff]  ;;  %vm549_vm4 = vmand %vm547_vm2, %vm548_vm3  ;;  %vm1070_vm9 = vcmp.eq.s32.totalorder %v2103_v39, 4  ;;  %s1493_s18 = sshll.u32 %s1888_s13, 4  ;;  %s1495_s4 = sshll.u32 %s2544_s11, 4  ;;  %s1494_s18 = int_to_ptr.vmem [resolvable:$true] %s1493_s18  ;;  %s1496_s4 = int_to_ptr.hbm [resolvable:$true] %s1495_s4 }
  0x1d   :  { %254 = vmatpush.msrb.mxu0 %v1986_v1  ;;  %225 = vmatpush.msra.mxu3 %v1998_v5  ;;  %v552_v17 = vld [vmem:[%s2535_s2] sm:$0xff]  ;;  %v2117_v45 = vsel %vm549_vm4, 1.0, %v1883_v44  ;;  %v2120_v49 = vsel %vm549_vm4, 0.0, %v1883_v44  ;;  %v1565_v59 = vld [vmem:[%s2534_s1 + $0x8] sm:$0xff] }
  0x1e   :  { %276 = vmatpush.msrb.mxu2 %v1998_v5  ;;  %176 = vmatpush.msra.mxu1 %v2027_v10  ;;  %v553_v18 = vld [vmem:[#allocation4] sm:$0xff] }
  0x1f   :  { %255 = vmatpush.msrb.mxu0 %v1988_v2  ;;  %226 = vmatpush.msra.mxu3 %v2027_v10  ;;  %v2077_v22 = vld [vmem:[%s2538_s5] ss:$0 sm:$0xff] }
  0x20   :  { %277 = vmatpush.msrb.mxu2 %v2027_v10  ;;  %177 = vmatpush.msra.mxu1 %v2033_v12  ;;  %v2113_v40 = vld [vmem:[%s2541_s8] ss:$0 sm:$0xff]  ;;  %s1884_s8 = smov 64  }
  0x21   :  { %356 = vmatpush.msra.mxu0 %v1986_v1  ;;  %227 = vmatpush.msra.mxu3 %v2033_v12 }
  0x22   :  { %278 = vmatpush.msrb.mxu2 %v2033_v12  ;;  %178 = vmatpush.msra.mxu1 %v2040_v14 }
  0x23   :  { %357 = vmatpush.msra.mxu0 %v1988_v2  ;;  %228 = vmatpush.msra.mxu3 %v2040_v14 }
  0x24   :  { %1547 = vmatmul.msk.f32.vlgmr.msrb.gmra.mxu0 %vm131_vm0, %v1546_v6  ;;  %279 = vmatpush.msrb.mxu2 %v2040_v14 }
  0x25   :  { %458 = vmatpush.msrb.mxu0 %v1986_v1  ;;  %1544 = vmatmul.msk.f32.vlgmr.msra.gmra.mxu2 %vm131_vm0, %v1543_v16 }
  0x26   :  { %378 = vmatpush.msra.mxu2 %v1998_v5  ;;  %305 = vmatpush.msrb.mxu1 %v1986_v1 }
  0x27   :  { %459 = vmatpush.msrb.mxu0 %v1988_v2  ;;  %327 = vmatpush.msrb.mxu3 %v1998_v5 }
  0x28   :  { %379 = vmatpush.msra.mxu2 %v2027_v10  ;;  %306 = vmatpush.msrb.mxu1 %v1988_v2 }
  0x29   :  { %328 = vmatpush.msrb.mxu3 %v2027_v10 }
  0x2a   :  { %380 = vmatpush.msra.mxu2 %v2033_v12 }
  0x2b   :  { %329 = vmatpush.msrb.mxu3 %v2033_v12 }
  0x2c   :  { %1553 = vmatmul.msk.f32.vlgmr.msra.gmra.mxu0 %vm131_vm0, %v1552_v7  ;;  %381 = vmatpush.msra.mxu2 %v2040_v14 }
  0x2d   :  { %578 = vmatpush.msra.mxu0 %v2019_v8  ;;  %330 = vmatpush.msrb.mxu3 %v2040_v14 }
  0x2f   :  { %579 = vmatpush.msra.mxu0 %v2031_v11 }
  0x31   :  { %580 = vmatpush.msra.mxu0 %v2038_v13 }
  0x33   :  { %581 = vmatpush.msra.mxu0 %v2046_v15 }
  0x34   :  { %1559 = vmatmul.msk.f32.vlgmr.msrb.gmra.mxu0 %vm131_vm0, %v1558_v9 }
  0x35   :  { %833 = vmatpush.msrb.mxu0 %v2019_v8 }
  0x37   :  { %834 = vmatpush.msrb.mxu0 %v2031_v11 }
  0x39   :  { %835 = vmatpush.msrb.mxu0 %v2038_v13 }
  0x3b   :  { %836 = vmatpush.msrb.mxu0 %v2046_v15 }
  0x8c   :  { %v558_v19 = vpop.permute.xlu0 %557 }
  0x8d   :  { %v560_v20 = vmul.f32 %v558_v19, %v552_v17  ;;  %v561_v21 = vmul.f32 %v558_v19, %v553_v18 }
  0x8f   :  { %592 = vrot.lane.b32.xlu1 %v561_v21, %s1882_s27  ;;  %1564 = vmatmul.msk.f32.vlgmr.msra.gmra.mxu0 %vm159_vm1, %v560_v20 }
  0x99   :  { %v152_v23 = vpop.f32.mrf.mxu0 }
  0x9a   :  { %v153_v24 = vadd.f32 %v2077_v22, %v152_v23  ;;  %v1567_v23 = vld [vmem:[%s2534_s1 + $0x10] sm:$0xff] }
  0x9c   :  { %v155_v25 = vmax.f32 %v153_v24, 0.0 }
  0x9e   :  { %1542 = vmatmul.msk.f32.vlgmr.msra.gmra.mxu1 %vm159_vm1, %v155_v25 }
  0x9f   :  { %407 = vmatpush.msra.mxu1 %v1986_v1 }
  0xa1   :  { %v257_v26 = vpop.f32.mrf.mxu0  ;;  %408 = vmatpush.msra.mxu1 %v1988_v2 }
  0xa2   :  { %v258_v27 = vadd.f32 %v2077_v22, %v257_v26 }
  0xa4   :  { %v260_v28 = vmax.f32 %v258_v27, 0.0 }
  0xa6   :  { %1548 = vmatmul.msk.f32.vlgmr.msrb.gmra.mxu2 %vm159_vm1, %v260_v28 }
  0xa7   :  { %480 = vmatpush.msrb.mxu2 %v1998_v5 }
  0xa8   :  { %v206_v35 = vpop.f32.mrf.mxu2 }
  0xa9   :  { %v359_v29 = vpop.f32.mrf.mxu0  ;;  %481 = vmatpush.msrb.mxu2 %v2027_v10  ;;  %v207_v36 = vadd.f32 %v2077_v22, %v206_v35 }
  0xaa   :  { %v360_v30 = vadd.f32 %v2077_v22, %v359_v29 }
  0xab   :  { %482 = vmatpush.msrb.mxu2 %v2033_v12  ;;  %v209_v38 = vmax.f32 %v207_v36, 0.0 }
  0xac   :  { %v362_v31 = vmax.f32 %v360_v30, 0.0 }
  0xad   :  { %483 = vmatpush.msrb.mxu2 %v2040_v14  ;;  %1545 = vmatmul.msk.f32.vlgmr.msra.gmra.mxu3 %vm159_vm1, %v209_v38 }
  0xae   :  { %1554 = vmatmul.msk.f32.vlgmr.msra.gmra.mxu2 %vm159_vm1, %v362_v31  ;;  %429 = vmatpush.msra.mxu3 %v1998_v5  ;;  %v1549_v31 = vld [vmem:[%s2533_s0 + $0x18] sm:$0xff] }
  0xaf   :  { %644 = vmatpush.msra.mxu2 %v2019_v8  ;;  %1550 = vmatmul.msk.f32.vlgmr.msrb.gmra.mxu1 %vm131_vm0, %v1549_v31 }
  0xb0   :  { %430 = vmatpush.msra.mxu3 %v2027_v10  ;;  %509 = vmatpush.msrb.mxu1 %v1986_v1 }
  0xb1   :  { %645 = vmatpush.msra.mxu2 %v2031_v11  ;;  %v461_v32 = vpop.f32.mrf.mxu0 }
  0xb2   :  { %v462_v33 = vadd.f32 %v2077_v22, %v461_v32  ;;  %431 = vmatpush.msra.mxu3 %v2033_v12  ;;  %510 = vmatpush.msrb.mxu1 %v1988_v2  ;;  %v1555_v32 = vld [vmem:[%s2533_s0 + $0x28] sm:$0xff] }
  0xb3   :  { %646 = vmatpush.msra.mxu2 %v2038_v13 }
  0xb4   :  { %v464_v34 = vmax.f32 %v462_v33, 0.0  ;;  %432 = vmatpush.msra.mxu3 %v2040_v14  ;;  %v1561_v33 = vld [vmem:[%s2533_s0 + $0x38] sm:$0xff] }
  0xb5   :  { %647 = vmatpush.msra.mxu2 %v2046_v15 }
  0xb6   :  { %1560 = vmatmul.msk.f32.vlgmr.msrb.gmra.mxu2 %vm159_vm1, %v464_v34 }
  0xb7   :  { %896 = vmatpush.msrb.mxu2 %v2019_v8  ;;  %1556 = vmatmul.msk.f32.vlgmr.msra.gmra.mxu1 %vm131_vm0, %v1555_v32 }
  0xb8   :  { %707 = vmatpush.msra.mxu1 %v2019_v8 }
  0xb9   :  { %897 = vmatpush.msrb.mxu2 %v2031_v11 }
  0xba   :  { %708 = vmatpush.msra.mxu1 %v2031_v11 }
  0xbb   :  { %898 = vmatpush.msrb.mxu2 %v2038_v13 }
  0xbc   :  { %709 = vmatpush.msra.mxu1 %v2038_v13 }
  0xbd   :  { %899 = vmatpush.msrb.mxu2 %v2046_v15 }
  0xbe   :  { %710 = vmatpush.msra.mxu1 %v2046_v15 }
  0xbf   :  { %1562 = vmatmul.msk.f32.vlgmr.msrb.gmra.mxu1 %vm131_vm0, %v1561_v33 }
  0xc0   :  { %959 = vmatpush.msrb.mxu1 %v2019_v8 }
  0xc2   :  { %960 = vmatpush.msrb.mxu1 %v2031_v11 }
  0xc4   :  { %961 = vmatpush.msrb.mxu1 %v2038_v13 }
  0xc6   :  { %962 = vmatpush.msrb.mxu1 %v2046_v15 }
 0x101   :  { %v593_v54 = vpop.permute.xlu1 %592 }
 0x10c   :  { %v583_v42 = vpop.f32.mrf.mxu0 }
 0x11b   :  { %v180_v41 = vpop.f32.mrf.mxu1 }
 0x11c   :  { %v181_v43 = vadd.f32 %v2113_v40, %v180_v41 }
 0x11e   :  { %v586_v46 = vadd.f32 %v583_v42, %v181_v43 }
 0x120   :  { %v587_v47 = vmul.f32 %v586_v46, %v2117_v45 }
 0x122   :  { %1608 = vtanh.f32 %v587_v47 }
 0x128   :  { %v1609_v48 = vpop.eup %1608 }
 0x129   :  { %v589_v50 = vmul.f32 %v1609_v48, %v2117_v45  ;;  %v2135_v3 = vpop.f32.mrf.mxu2 }
 0x12b   :  { %v590_v51 = vadd.f32 %v589_v50, %v2120_v49 }
 0x12c   :  { %v308_v37 = vpop.f32.mrf.mxu1 }
 0x12d   :  { %597 = vrot.lane.b32.xlu0 %v590_v51, %s1884_s8  ;;  %v595_v55 = vmul.f32 %v593_v54, %v590_v51  ;;  %v309_v38 = vadd.f32 %v2077_v22, %v308_v37 }
 0x12f   :  { %v311_v41 = vmax.f32 %v309_v38, 0.0 }
 0x130   :  { %v230_v7 = vpop.f32.mrf.mxu3 }
 0x131   :  { %v2137_v4 = vpop.f32.mrf.mxu2  ;;  %v231_v9 = vadd.f32 %v2113_v40, %v230_v7  ;;  %1551 = vmatmul.msk.f32.vlgmr.msrb.gmra.mxu3 %vm159_vm1, %v311_v41 }
 0x132   :  { %531 = vmatpush.msrb.mxu3 %v1998_v5 }
 0x134   :  { %v410_v42 = vpop.f32.mrf.mxu1  ;;  %532 = vmatpush.msrb.mxu3 %v2027_v10  ;;  %v282_v10 = vadd.f32 %v2113_v40, %v2135_v3 }
 0x135   :  { %v411_v43 = vadd.f32 %v2077_v22, %v410_v42  ;;  %v1573_v42 = vld [vmem:[%s2534_s1 + $0x28] sm:$0xff] }
 0x136   :  { %533 = vmatpush.msrb.mxu3 %v2033_v12 }
 0x137   :  { %v413_v44 = vmax.f32 %v411_v43, 0.0 }
 0x138   :  { %534 = vmatpush.msrb.mxu3 %v2040_v14 }
 0x139   :  { %v2139_v6 = vpop.f32.mrf.mxu2  ;;  %1557 = vmatmul.msk.f32.vlgmr.msra.gmra.mxu3 %vm159_vm1, %v413_v44 }
 0x13a   :  { %770 = vmatpush.msra.mxu3 %v2019_v8 }
 0x13c   :  { %v512_v46 = vpop.f32.mrf.mxu1  ;;  %771 = vmatpush.msra.mxu3 %v2031_v11 }
 0x13d   :  { %v513_v47 = vadd.f32 %v2077_v22, %v512_v46 }
 0x13e   :  { %772 = vmatpush.msra.mxu3 %v2038_v13 }
 0x13f   :  { %v515_v5 = vmax.f32 %v513_v47, 0.0 }
 0x140   :  { %773 = vmatpush.msra.mxu3 %v2046_v15 }
 0x141   :  { %1563 = vmatmul.msk.f32.vlgmr.msrb.gmra.mxu3 %vm159_vm1, %v515_v5 }
 0x142   :  { %1022 = vmatpush.msrb.mxu3 %v2019_v8  ;;  %v1569_v8 = vld [vmem:[%s2534_s1 + $0x18] sm:$0xff] }
 0x144   :  { %1023 = vmatpush.msrb.mxu3 %v2031_v11 }
 0x146   :  { %1024 = vmatpush.msrb.mxu3 %v2038_v13 }
 0x148   :  { %1025 = vmatpush.msrb.mxu3 %v2046_v15 }
 0x19f   :  { %v598_v52 = vpop.permute.xlu0 %597 }
 0x1a0   :  { %v600_v53 = vmul.f32 %v598_v52, %v590_v51 }
 0x1a2   :  { %602 = vrot.lane.b32.xlu1 %v600_v53, %s1882_s27 }
 0x214   :  { %v603_v56 = vpop.permute.xlu1 %602 }
 0x215   :  { %v605_v57 = vadd.f32 %v603_v56, %v595_v55 }
 0x217   :  { %1610 = vtanh.f32 %v605_v57 }
 0x21d   :  { %v1611_v58 = vpop.eup %1610 }
 0x21e   :  { %608 = vrot.lane.b32.xlu2 %v1611_v58, %s1884_s8 }
 0x226   :  { %621 = vperm.xlu2 %1603, %v1565_v59  }
 0x278   :  { %v609_v60 = vpop.permute.xlu2 %608 }
 0x279   :  { %v2130_v61 = vmul.f32 %v609_v60, %v590_v51 }
 0x280   :  { %v622_v62 = vpop.permute.xlu2 %621 }
 0x281   :  { %v624_v63 = vmul.f32 %v622_v62, %v2130_v61  ;;  %v625_v26 = vmul.f32 %v622_v62, %v605_v57  ;;  %v332_v62 = vpop.f32.mrf.mxu3 }
 0x282   :  { %v333_v3 = vadd.f32 %v2113_v40, %v332_v62 }
 0x283   :  { %628 = vrot.lane.b32.xlu0 %v624_v63, %s1882_s27 }
 0x289   :  { %v434_v63 = vpop.f32.mrf.mxu3 }
 0x2f5   :  { %v629_v0 = vpop.permute.xlu0 %628 }
 0x2f6   :  { %1566 = vmatmul.msk.f32.vlgmr.msra.gmra.mxu2 %vm159_vm1, %v629_v0  ;;  %v2216_v0 = vpop.f32.mrf.mxu3 }
 0x379   :  { %v649_v16 = vpop.f32.mrf.mxu2 }
 0x37a   :  { %v652_v17 = vadd.f32 %v649_v16, %v231_v9 }
 0x37c   :  { %v653_v18 = vmul.f32 %v652_v17, %v2117_v45 }
 0x37e   :  { %1612 = vtanh.f32 %v653_v18 }
 0x384   :  { %v1613_v19 = vpop.eup %1612 }
 0x385   :  { %v655_v20 = vmul.f32 %v1613_v19, %v2117_v45 }
 0x387   :  { %v656_v21 = vadd.f32 %v655_v20, %v2120_v49  ;;  %v1571_v20 = vld [vmem:[%s2534_s1 + $0x20] sm:$0xff] }
 0x389   :  { %659 = vrot.lane.b32.xlu1 %v656_v21, %s1884_s8  ;;  %v657_v27 = vmul.f32 %v656_v21, %v625_v26 }
 0x391   :  { %684 = vperm.xlu1 %1604, %v1567_v23  }
 0x3fb   :  { %v660_v24 = vpop.permute.xlu1 %659 }
 0x3fc   :  { %v662_v25 = vmul.f32 %v660_v24, %v656_v21 }
 0x3fe   :  { %664 = vrot.lane.b32.xlu2 %v662_v25, %s1882_s27 }
 0x403   :  { %v685_v34 = vpop.permute.xlu1 %684 }
 0x458   :  { %v665_v28 = vpop.permute.xlu2 %664 }
 0x459   :  { %v2150_v29 = vadd.f32 %v665_v28, %v657_v27 }
 0x45b   :  { %1614 = vtanh.f32 %v2150_v29  ;;  %v688_v15 = vmul.f32 %v685_v34, %v2150_v29 }
 0x461   :  { %v1615_v30 = vpop.eup %1614 }
 0x462   :  { %670 = vrot.lane.b32.xlu0 %v1615_v30, %s1884_s8 }
 0x4d4   :  { %v671_v1 = vpop.permute.xlu0 %670 }
 0x4d5   :  { %v2176_v2 = vmul.f32 %v671_v1, %v656_v21  ;;  %v384_v1 = vadd.f32 %v2113_v40, %v2137_v4 }
 0x4d7   :  { %v687_v35 = vmul.f32 %v685_v34, %v2176_v2 }
 0x4d9   :  { %691 = vrot.lane.b32.xlu2 %v687_v35, %s1882_s27 }
 0x533   :  { %v692_v36 = vpop.permute.xlu2 %691 }
 0x534   :  { %1568 = vmatmul.msk.f32.vlgmr.msra.gmra.mxu1 %vm159_vm1, %v692_v36 }
 0x5b1   :  { %v712_v12 = vpop.f32.mrf.mxu1 }
 0x5b2   :  { %v715_v14 = vadd.f32 %v712_v12, %v282_v10 }
 0x5b4   :  { %v716_v22 = vmul.f32 %v715_v14, %v2117_v45 }
 0x5b6   :  { %1616 = vtanh.f32 %v716_v22 }
 0x5bc   :  { %v1617_v48 = vpop.eup %1616 }
 0x5bd   :  { %v718_v50 = vmul.f32 %v1617_v48, %v2117_v45 }
 0x5bf   :  { %v719_v51 = vadd.f32 %v718_v50, %v2120_v49 }
 0x5c1   :  { %722 = vrot.lane.b32.xlu0 %v719_v51, %s1884_s8  ;;  %v720_v52 = vmul.f32 %v719_v51, %v688_v15 }
 0x5c9   :  { %747 = vperm.xlu0 %1602, %v1569_v8  }
 0x633   :  { %v723_v11 = vpop.permute.xlu0 %722 }
 0x634   :  { %v725_v13 = vmul.f32 %v723_v11, %v719_v51 }
 0x636   :  { %727 = vrot.lane.b32.xlu1 %v725_v13, %s1882_s27 }
 0x63b   :  { %v748_v58 = vpop.permute.xlu0 %747 }
 0x6a8   :  { %v728_v53 = vpop.permute.xlu1 %727 }
 0x6a9   :  { %v730_v54 = vadd.f32 %v728_v53, %v720_v52 }
 0x6ab   :  { %1618 = vtanh.f32 %v730_v54  ;;  %v751_v24 = vmul.f32 %v748_v58, %v730_v54  ;;  %v1575_v54 = vld [vmem:[%s2534_s1 + $0x30] sm:$0xff] }
 0x6b1   :  { %v1619_v55 = vpop.eup %1618 }
 0x6b2   :  { %733 = vrot.lane.b32.xlu2 %v1619_v55, %s1884_s8 }
 0x70c   :  { %v734_v56 = vpop.permute.xlu2 %733 }
 0x70d   :  { %v2211_v57 = vmul.f32 %v734_v56, %v719_v51  ;;  %v435_v51 = vadd.f32 %v2113_v40, %v434_v63 }
 0x70f   :  { %v750_v59 = vmul.f32 %v748_v58, %v2211_v57 }
 0x711   :  { %754 = vrot.lane.b32.xlu1 %v750_v59, %s1882_s27 }
 0x783   :  { %v755_v60 = vpop.permute.xlu1 %754 }
 0x784   :  { %1570 = vmatmul.msk.f32.vlgmr.msra.gmra.mxu3 %vm159_vm1, %v755_v60 }
 0x807   :  { %v775_v7 = vpop.f32.mrf.mxu3 }
 0x808   :  { %v778_v9 = vadd.f32 %v775_v7, %v333_v3 }
 0x80a   :  { %v779_v16 = vmul.f32 %v778_v9, %v2117_v45 }
 0x80c   :  { %1620 = vtanh.f32 %v779_v16 }
 0x812   :  { %v1621_v17 = vpop.eup %1620 }
 0x813   :  { %v781_v18 = vmul.f32 %v1621_v17, %v2117_v45 }
 0x815   :  { %v782_v19 = vadd.f32 %v781_v18, %v2120_v49  ;;  %v486_v18 = vadd.f32 %v2113_v40, %v2139_v6 }
 0x817   :  { %785 = vrot.lane.b32.xlu2 %v782_v19, %s1884_s8  ;;  %v783_v25 = vmul.f32 %v782_v19, %v751_v24 }
 0x81f   :  { %810 = vperm.xlu2 %1603, %v1571_v20  }
 0x871   :  { %v786_v21 = vpop.permute.xlu2 %785 }
 0x872   :  { %v788_v23 = vmul.f32 %v786_v21, %v782_v19 }
 0x874   :  { %790 = vrot.lane.b32.xlu0 %v788_v23, %s1882_s27 }
 0x879   :  { %v811_v31 = vpop.permute.xlu2 %810 }
 0x8e6   :  { %v791_v26 = vpop.permute.xlu0 %790 }
 0x8e7   :  { %v793_v27 = vadd.f32 %v791_v26, %v783_v25  ;;  %v1577_v26 = vld [vmem:[%s2534_s1 + $0x38] sm:$0xff] }
 0x8e9   :  { %1622 = vtanh.f32 %v793_v27  ;;  %v814_v4 = vmul.f32 %v811_v31, %v793_v27 }
 0x8ef   :  { %v1623_v28 = vpop.eup %1622 }
 0x8f0   :  { %796 = vrot.lane.b32.xlu1 %v1623_v28, %s1884_s8 }
 0x962   :  { %v797_v29 = vpop.permute.xlu1 %796 }
 0x963   :  { %v2228_v30 = vmul.f32 %v797_v29, %v782_v19 }
 0x965   :  { %v813_v32 = vmul.f32 %v811_v31, %v2228_v30 }
 0x967   :  { %817 = vrot.lane.b32.xlu0 %v813_v32, %s1882_s27 }
 0x9d9   :  { %v818_v33 = vpop.permute.xlu0 %817 }
 0x9da   :  { %1572 = vmatmul.msk.f32.vlgmr.msrb.gmra.mxu0 %vm159_vm1, %v818_v33 }
 0xa57   :  { %v838_v34 = vpop.f32.mrf.mxu0 }
 0xa58   :  { %v841_v35 = vadd.f32 %v838_v34, %v384_v1 }
 0xa5a   :  { %v842_v36 = vmul.f32 %v841_v35, %v2117_v45 }
 0xa5c   :  { %1624 = vtanh.f32 %v842_v36 }
 0xa62   :  { %v1625_v37 = vpop.eup %1624 }
 0xa63   :  { %v844_v38 = vmul.f32 %v1625_v37, %v2117_v45 }
 0xa65   :  { %v845_v41 = vadd.f32 %v844_v38, %v2120_v49  ;;  %v537_v38 = vadd.f32 %v2113_v40, %v2216_v0  ;;  %v1067_v40 = vld [vmem:[#allocation12 + $0x18] sm:$0xff]  ;;  %v1066_v0 = vld [vmem:[#allocation12 + $0x10] sm:$0xff] }
 0xa66   :  { %1141 = vmatpush.msra.mxu2 %v1067_v40  ;;  %1193 = vmatpush.msra.mxu1 %v1067_v40 }
 0xa67   :  { %848 = vrot.lane.b32.xlu1 %v845_v41, %s1884_s8  ;;  %v846_v46 = vmul.f32 %v845_v41, %v814_v4  ;;  %1245 = vmatpush.msra.mxu3 %v1067_v40 }
 0xa68   :  { %1090 = vmatpush.msra.mxu0 %v1067_v40  ;;  %1142 = vmatpush.msra.mxu2 %v1066_v0 }
 0xa69   :  { %1194 = vmatpush.msra.mxu1 %v1066_v0  ;;  %1246 = vmatpush.msra.mxu3 %v1066_v0 }
 0xa6a   :  { %1091 = vmatpush.msra.mxu0 %v1066_v0 }
 0xa6f   :  { %873 = vperm.xlu1 %1604, %v1573_v42  }
 0xad9   :  { %v849_v43 = vpop.permute.xlu1 %848 }
 0xada   :  { %v851_v44 = vmul.f32 %v849_v43, %v845_v41 }
 0xadc   :  { %853 = vrot.lane.b32.xlu2 %v851_v44, %s1882_s27 }
 0xae1   :  { %v874_v22 = vpop.permute.xlu1 %873 }
 0xb36   :  { %v854_v47 = vpop.permute.xlu2 %853 }
 0xb37   :  { %v856_v5 = vadd.f32 %v854_v47, %v846_v46 }
 0xb39   :  { %1626 = vtanh.f32 %v856_v5  ;;  %v877_v58 = vmul.f32 %v874_v22, %v856_v5 }
 0xb3f   :  { %v1627_v10 = vpop.eup %1626 }
 0xb40   :  { %859 = vrot.lane.b32.xlu0 %v1627_v10, %s1884_s8 }
 0xbb2   :  { %v860_v12 = vpop.permute.xlu0 %859 }
 0xbb3   :  { %v2244_v14 = vmul.f32 %v860_v12, %v845_v41 }
 0xbb5   :  { %v876_v48 = vmul.f32 %v874_v22, %v2244_v14 }
 0xbb7   :  { %880 = vrot.lane.b32.xlu2 %v876_v48, %s1882_s27 }
 0xc11   :  { %v881_v50 = vpop.permute.xlu2 %880 }
 0xc12   :  { %1574 = vmatmul.msk.f32.vlgmr.msrb.gmra.mxu2 %vm159_vm1, %v881_v50 }
 0xc95   :  { %v901_v8 = vpop.f32.mrf.mxu2 }
 0xc96   :  { %v904_v11 = vadd.f32 %v901_v8, %v435_v51 }
 0xc98   :  { %v905_v13 = vmul.f32 %v904_v11, %v2117_v45 }
 0xc9a   :  { %1628 = vtanh.f32 %v905_v13 }
 0xca0   :  { %v1629_v15 = vpop.eup %1628 }
 0xca1   :  { %v907_v52 = vmul.f32 %v1629_v15, %v2117_v45 }
 0xca3   :  { %v908_v53 = vadd.f32 %v907_v52, %v2120_v49 }
 0xca5   :  { %911 = vrot.lane.b32.xlu0 %v908_v53, %s1884_s8  ;;  %v909_v59 = vmul.f32 %v908_v53, %v877_v58 }
 0xcad   :  { %936 = vperm.xlu0 %1602, %v1575_v54   ;;  %v2332_v54 = vld [vmem:[%s2543_s10] ss:$0 sm:$0xff]  ;;  %s1885_s10 = smov 96  }
 0xd17   :  { %v912_v55 = vpop.permute.xlu0 %911 }
 0xd18   :  { %v914_v56 = vmul.f32 %v912_v55, %v908_v53 }
 0xd1a   :  { %916 = vrot.lane.b32.xlu1 %v914_v56, %s1882_s27 }
 0xd1f   :  { %v937_v9 = vpop.permute.xlu0 %936 }
 0xd8c   :  { %v917_v60 = vpop.permute.xlu1 %916 }
 0xd8d   :  { %v919_v62 = vadd.f32 %v917_v60, %v909_v59 }
 0xd8f   :  { %1630 = vtanh.f32 %v919_v62  ;;  %v940_v6 = vmul.f32 %v937_v9, %v919_v62 }
 0xd95   :  { %v1631_v63 = vpop.eup %1630 }
 0xd96   :  { %922 = vrot.lane.b32.xlu2 %v1631_v63, %s1884_s8 }
 0xdf0   :  { %v923_v3 = vpop.permute.xlu2 %922 }
 0xdf1   :  { %v2259_v7 = vmul.f32 %v923_v3, %v908_v53 }
 0xdf3   :  { %v939_v16 = vmul.f32 %v937_v9, %v2259_v7 }
 0xdf5   :  { %943 = vrot.lane.b32.xlu1 %v939_v16, %s1882_s27 }
 0xe67   :  { %v944_v17 = vpop.permute.xlu1 %943 }
 0xe68   :  { %1576 = vmatmul.msk.f32.vlgmr.msrb.gmra.mxu1 %vm159_vm1, %v944_v17 }
 0xee5   :  { %v964_v19 = vpop.f32.mrf.mxu1 }
 0xee6   :  { %v967_v20 = vadd.f32 %v964_v19, %v486_v18 }
 0xee8   :  { %v968_v21 = vmul.f32 %v967_v20, %v2117_v45 }
 0xeea   :  { %1632 = vtanh.f32 %v968_v21 }
 0xef0   :  { %v1633_v23 = vpop.eup %1632 }
 0xef1   :  { %v970_v24 = vmul.f32 %v1633_v23, %v2117_v45 }
 0xef3   :  { %v971_v25 = vadd.f32 %v970_v24, %v2120_v49 }
 0xef5   :  { %974 = vrot.lane.b32.xlu2 %v971_v25, %s1884_s8  ;;  %v972_v29 = vmul.f32 %v971_v25, %v940_v6 }
 0xefd   :  { %999 = vperm.xlu2 %1603, %v1577_v26  }
 0xf4f   :  { %v975_v27 = vpop.permute.xlu2 %974 }
 0xf50   :  { %v977_v28 = vmul.f32 %v975_v27, %v971_v25 }
 0xf52   :  { %979 = vrot.lane.b32.xlu0 %v977_v28, %s1882_s27 }
 0xf57   :  { %v2280_v35 = vpop.permute.xlu2 %999 }
 0xfc4   :  { %v980_v31 = vpop.permute.xlu0 %979 }
 0xfc5   :  { %v2274_v32 = vadd.f32 %v980_v31, %v972_v29 }
 0xfc7   :  { %1634 = vtanh.f32 %v2274_v32 }
 0xfcd   :  { %v1635_v33 = vpop.eup %1634 }
 0xfce   :  { %985 = vrot.lane.b32.xlu1 %v1635_v33, %s1884_s8 }
0x1040   :  { %v986_v1 = vpop.permute.xlu1 %985 }
0x1041   :  { %v2278_v34 = vmul.f32 %v986_v1, %v971_v25 }
0x1043   :  { %v1002_v36 = vmul.f32 %v2280_v35, %v2278_v34 }
0x1045   :  { %1006 = vrot.lane.b32.xlu0 %v1002_v36, %s1882_s27 }
0x10b7   :  { %v1007_v37 = vpop.permute.xlu0 %1006 }
0x10b8   :  { %1578 = vmatmul.msk.f32.vlgmr.msrb.gmra.mxu3 %vm159_vm1, %v1007_v37 }
0x113b   :  { %v1027_v41 = vpop.f32.mrf.mxu3 }
0x113c   :  { %v1030_v42 = vadd.f32 %v1027_v41, %v537_v38 }
0x113e   :  { %v1031_v43 = vmul.f32 %v1030_v42, %v2117_v45 }
0x1140   :  { %1636 = vtanh.f32 %v1031_v43 }
0x1146   :  { %v1637_v44 = vpop.eup %1636 }
0x1147   :  { %v1033_v4 = vmul.f32 %v1637_v44, %v2117_v45  ;;  %v1065_v45 = vld [vmem:[#allocation12 + $0x8] sm:$0xff] }
0x1148   :  { %1143 = vmatpush.msra.mxu2 %v1065_v45  ;;  %1195 = vmatpush.msra.mxu1 %v1065_v45 }
0x1149   :  { %v2291_v46 = vadd.f32 %v1033_v4, %v2120_v49  ;;  %v1064_v49 = vld [vmem:[#allocation12] sm:$0xff]  ;;  %1247 = vmatpush.msra.mxu3 %v1065_v45  ;;  %1092 = vmatpush.msra.mxu0 %v1065_v45 }
0x114a   :  { %1144 = vmatpush.msra.mxu2 %v1064_v49  ;;  %1196 = vmatpush.msra.mxu1 %v1064_v49 }
0x114b   :  { %1037 = vrot.lane.b32.xlu1 %v2291_v46, %s1884_s8  ;;  %1248 = vmatpush.msra.mxu3 %v1064_v49 }
0x114c   :  { %1349 = vmatpush.msrb.mxu2 %v1067_v40  ;;  %1401 = vmatpush.msrb.mxu1 %v1067_v40 }
0x114d   :  { %1093 = vmatpush.msra.mxu0 %v1064_v49  ;;  %1453 = vmatpush.msrb.mxu3 %v1067_v40 }
0x114e   :  { %1350 = vmatpush.msrb.mxu2 %v1066_v0  ;;  %1402 = vmatpush.msrb.mxu1 %v1066_v0 }
0x114f   :  { %1297 = vmatpush.msrb.mxu0 %v1067_v40  ;;  %1454 = vmatpush.msrb.mxu3 %v1066_v0 }
0x1150   :  { %1351 = vmatpush.msrb.mxu2 %v1065_v45  ;;  %1403 = vmatpush.msrb.mxu1 %v1065_v45 }
0x1151   :  { %1298 = vmatpush.msrb.mxu0 %v1066_v0  ;;  %1455 = vmatpush.msrb.mxu3 %v1065_v45 }
0x1152   :  { %1352 = vmatpush.msrb.mxu2 %v1064_v49  ;;  %1404 = vmatpush.msrb.mxu1 %v1064_v49 }
0x1153   :  { %675 = vrot.lane.b32.xlu1 %v2176_v2, %s1882_s27  ;;  %1299 = vmatpush.msrb.mxu0 %v1065_v45 }
0x1154   :  { %1456 = vmatpush.msrb.mxu3 %v1064_v49 }
0x1155   :  { %1300 = vmatpush.msrb.mxu0 %v1064_v49 }
0x115b   :  { %738 = vrot.lane.b32.xlu1 %v2211_v57, %s1882_s27 }
0x1163   :  { %864 = vrot.lane.b32.xlu1 %v2244_v14, %s1882_s27 }
0x11bd   :  { %v1038_v2 = vpop.permute.xlu1 %1037 }
0x11be   :  { %v1040_v57 = vmul.f32 %v1038_v2, %v2291_v46 }
0x11c0   :  { %1042 = vrot.lane.b32.xlu2 %v1040_v57, %s1882_s27 }
0x11c5   :  { %v676_v47 = vpop.permute.xlu1 %675 }
0x11c6   :  { %679 = vst.msk [vmem:[#allocation3 + $0x8] sm:$0xff] %vm159_vm1, %v676_v47 }
0x11c8   :  { %801 = vrot.lane.b32.xlu2 %v2228_v30, %s1882_s27  ;;  %v1003_v30 = vmul.f32 %v2280_v35, %v2274_v32 }
0x11ca   :  { %v1035_v22 = vmul.f32 %v2291_v46, %v1003_v30 }
0x11cd   :  { %v739_v5 = vpop.permute.xlu1 %738  ;;  %v1125_v10 = vld [vmem:[#allocation3 + $0x8] sm:$0xff] }
0x11ce   :  { %742 = vst.msk [vmem:[#allocation3 + $0x10] sm:$0xff] %vm159_vm1, %v739_v5  ;;  %1580 = vmatmul.msk.f32.vlgmr.msra.gmra.mxu2 %vm159_vm1, %v1125_v10 }
0x11d0   :  { %927 = vrot.lane.b32.xlu2 %v2259_v7, %s1882_s27 }
0x11d5   :  { %v865_v12 = vpop.permute.xlu1 %864  ;;  %v1177_v14 = vld [vmem:[#allocation3 + $0x10] sm:$0xff] }
0x11d6   :  { %868 = vst.msk [vmem:[#allocation3 + $0x20] sm:$0xff] %vm159_vm1, %v865_v12  ;;  %1581 = vmatmul.msk.f32.vlgmr.msra.gmra.mxu1 %vm159_vm1, %v1177_v14 }
0x11d8   :  { %990 = vrot.lane.b32.xlu2 %v2278_v34, %s1882_s27 }
0x11dd   :  { %v1281_v16 = vld [vmem:[#allocation3 + $0x20] sm:$0xff] }
0x121a   :  { %v1043_v48 = vpop.permute.xlu2 %1042 }
0x121b   :  { %v2317_v50 = vadd.f32 %v1043_v48, %v1035_v22 }
0x121d   :  { %1638 = vtanh.f32 %v2317_v50 }
0x1222   :  { %v802_v51 = vpop.permute.xlu2 %801 }
0x1223   :  { %v1639_v8 = vpop.eup %1638  ;;  %805 = vst.msk [vmem:[#allocation3 + $0x18] sm:$0xff] %vm159_vm1, %v802_v51 }
0x1224   :  { %1048 = vrot.lane.b32.xlu0 %v1639_v8, %s1884_s8  ;;  %s1509_s8 = sshll.u32 %s2545_s12, 4  ;;  %s1887_s12 = smov [#allocation16]   ;;  %s1510_s8 = int_to_ptr.hbm [resolvable:$true] %s1509_s8 }
0x1225   :  { %s2476_s14 = sshll.u32 %s1887_s12, 4  ;;  %s1519_s14 = int_to_ptr.vmem [resolvable:$true] %s2476_s14 }
0x122a   :  { %v928_v11 = vpop.permute.xlu2 %927  ;;  %v1229_v13 = vld [vmem:[#allocation3 + $0x18] sm:$0xff] }
0x122b   :  { %931 = vst.msk [vmem:[#allocation3 + $0x28] sm:$0xff] %vm159_vm1, %v928_v11  ;;  %1582 = vmatmul.msk.f32.vlgmr.msra.gmra.mxu3 %vm159_vm1, %v1229_v13 }
0x122c   :  { %613 = vrot.lane.b32.xlu0 %v2130_v61, %s1882_s27 }
0x1232   :  { %v991_v15 = vpop.permute.xlu2 %990  ;;  %v1333_v52 = vld [vmem:[#allocation3 + $0x28] sm:$0xff] }
0x1233   :  { %994 = vst.msk [vmem:[#allocation3 + $0x30] sm:$0xff] %vm159_vm1, %v991_v15  ;;  %1584 = vmatmul.msk.f32.vlgmr.msrb.gmra.mxu2 %vm159_vm1, %v1333_v52 }
0x123a   :  { %v1385_v53 = vld [vmem:[#allocation3 + $0x30] sm:$0xff] }
0x123b   :  { %1585 = vmatmul.msk.f32.vlgmr.msrb.gmra.mxu1 %vm159_vm1, %v1385_v53 }
0x1251   :  { %v1146_v55 = vpop.f32.mrf.mxu2 }
0x1252   :  { %v2336_v56 = vadd.f32 %v2332_v54, %v1146_v55 }
0x1253   :  { %v1198_v61 = vpop.f32.mrf.mxu1 }
0x1254   :  { %v2339_v58 = vadd.f32 %v2332_v54, %v1198_v61  ;;  %v1149_v59 = vsel %vm1069_vm5, %v2336_v56, -1e+30  ;;  %v1173_v10 = vsel %vm1070_vm9, %v2336_v56, 0.0 }
0x1255   :  { %1150 = vmax.xlane.f32.xlu1 %v1149_v59 }
0x1256   :  { %v2347_v60 = vsel %vm1069_vm5, %v2339_v58, -1e+30 }
0x1257   :  { %1202 = vmax.xlane.f32.xlu2 %v2347_v60 }
0x1296   :  { %v1049_v62 = vpop.permute.xlu0 %1048 }
0x1297   :  { %v1051_v63 = vmul.f32 %v1049_v62, %v2291_v46 }
0x1299   :  { %1053 = vrot.lane.b32.xlu0 %v1051_v63, %s1882_s27 }
0x129e   :  { %v614_v3 = vpop.permute.xlu0 %613 }
0x129f   :  { %616 = vst.msk [vmem:[#allocation3] sm:$0xff] %vm159_vm1, %v614_v3 }
0x12a6   :  { %v1071_v7 = vld [vmem:[#allocation3] sm:$0xff] }
0x12a7   :  { %1579 = vmatmul.msk.f32.vlgmr.msra.gmra.mxu0 %vm159_vm1, %v1071_v7 }
0x12ae   :  { %v1250_v9 = vpop.f32.mrf.mxu3 }
0x12af   :  { %v2355_v17 = vadd.f32 %v2332_v54, %v1250_v9  ;;  %1583 = vmatmul.msk.f32.vlgmr.msrb.gmra.mxu0 %vm159_vm1, %v1281_v16 }
0x12b1   :  { %v2361_v18 = vsel %vm1069_vm5, %v2355_v17, -1e+30 }
0x12b2   :  { %1254 = vmax.xlane.f32.xlu2 %v2361_v18 }
0x12b6   :  { %v1354_v19 = vpop.f32.mrf.mxu2 }
0x12b7   :  { %v2365_v20 = vadd.f32 %v2332_v54, %v1354_v19 }
0x12b8   :  { %v1406_v21 = vpop.f32.mrf.mxu1 }
0x12b9   :  { %v2368_v23 = vadd.f32 %v2332_v54, %v1406_v21  ;;  %v1357_v24 = vsel %vm1069_vm5, %v2365_v20, -1e+30 }
0x12ba   :  { %1358 = vmax.xlane.f32.xlu1 %v1357_v24 }
0x12bb   :  { %v2376_v25 = vsel %vm1069_vm5, %v2368_v23, -1e+30 }
0x12bc   :  { %1410 = vmax.xlane.f32.xlu2 %v2376_v25 }
0x12c8   :  { %v1151_v26 = vpop.xlane.xlu1 %1150 }
0x12c9   :  { %v1152_v27 = vsub.f32 %v1149_v59, %v1151_v26 }
0x12ca   :  { %v1203_v38 = vpop.xlane.xlu2 %1202 }
0x12cb   :  { %v1153_v28 = vmul.f32 1.442695, %v1152_v27  ;;  %v1204_v14 = vsub.f32 %v2347_v60, %v1203_v38 }
0x12cd   :  { %1640 = vpow2.f32 %v1153_v28  ;;  %v1205_v30 = vmul.f32 1.442695, %v1204_v14 }
0x12d3   :  { %v1641_v6 = vpop.eup %1640 }
0x12d4   :  { %v1155_v29 = vsel %vm1069_vm5, %v1641_v6, 0.0 }
0x12d5   :  { %1156 = vadd.xlane.f32.xlu2 %v1155_v29 }
0x130b   :  { %v1054_v31 = vpop.permute.xlu0 %1053 }
0x130c   :  { %1057 = vst.msk [vmem:[#allocation3 + $0x38] sm:$0xff] %vm159_vm1, %v1054_v31 }
0x130d   :  { %1058 = vst.msk [vmem:[#allocation14] sm:$0xff] %vm159_vm1, %v1054_v31 }
0x130e   :  { %1512 = dma.vmem_to_hbm [thread:$0]  %s1508_s30, 128, %s1510_s8, [#allocation15]  }
0x1313   :  { %v1437_v32 = vld [vmem:[#allocation3 + $0x38] sm:$0xff] }
0x1314   :  { %1586 = vmatmul.msk.f32.vlgmr.msrb.gmra.mxu3 %vm159_vm1, %v1437_v32 }
0x1324   :  { %v1095_v33 = vpop.f32.mrf.mxu0 }
0x1325   :  { %v2385_v1 = vadd.f32 %v2332_v54, %v1095_v33  ;;  %v1255_v41 = vpop.xlane.xlu2 %1254 }
0x1326   :  { %v1256_v53 = vsub.f32 %v2361_v18, %v1255_v41 }
0x1327   :  { %v1098_v34 = vsel %vm1069_vm5, %v2385_v1, -1e+30 }
0x1328   :  { %1099 = vmax.xlane.f32.xlu0 %v1098_v34  ;;  %v1257_v61 = vmul.f32 1.442695, %v1256_v53 }
0x132c   :  { %v1302_v35 = vpop.f32.mrf.mxu0 }
0x132d   :  { %v2391_v36 = vadd.f32 %v2332_v54, %v1302_v35  ;;  %v1359_v22 = vpop.xlane.xlu1 %1358 }
0x132e   :  { %v1360_v8 = vsub.f32 %v1357_v24, %v1359_v22  ;;  %v1225_v22 = vsel %vm1070_vm9, %v2339_v58, 0.0 }
0x132f   :  { %v1305_v37 = vsel %vm1069_vm5, %v2391_v36, -1e+30  ;;  %v1411_v42 = vpop.xlane.xlu2 %1410 }
0x1330   :  { %1306 = vmax.xlane.f32.xlu0 %v1305_v37  ;;  %v1361_v52 = vmul.f32 1.442695, %v1360_v8  ;;  %v1412_v63 = vsub.f32 %v2376_v25, %v1411_v42 }
0x1332   :  { %v1413_v16 = vmul.f32 1.442695, %v1412_v63 }
0x1348   :  { %v1157_v43 = vpop.xlane.xlu2 %1156 }
0x1349   :  { %1642 = vrcp.f32 %v1157_v43  ;;  %v1169_v40 = vand.u32 2147483648, %v1157_v43  ;;  %v1167_v45 = vand.u32 2147483647, %v1157_v43  ;;  %vm1163_vm7 = vweird.f32 %v1157_v43 }
0x134a   :  { %1644 = vpow2.f32 %v1205_v30 }
0x134b   :  { %v1170_v2 = vor.u32 1.1754944e-38, %v1169_v40  ;;  %vm1168_vm10 = vcmp.eq.f32.partialorder %v1167_v45, 8.507059e+37 }
0x134f   :  { %v1643_v44 = vpop.eup %1642 }
0x1350   :  { %v1159_v4 = vmul.f32 %v1643_v44, %v1157_v43  ;;  %vm1164_vm6 = vweird.f32 %v1643_v44  ;;  %v1645_v56 = vpop.eup %1644 }
0x1351   :  { %vm1165_vm8 = vmor %vm1163_vm7, %vm1164_vm6 }
0x1352   :  { %v1160_v46 = vsub.f32 1.0, %v1159_v4 }
0x1354   :  { %v1161_v0 = vmul.f32 %v1643_v44, %v1160_v46 }
0x1356   :  { %v1162_v49 = vadd.f32 %v1643_v44, %v1161_v0 }
0x1358   :  { %v1166_v57 = vsel %vm1165_vm8, %v1643_v44, %v1162_v49 }
0x1359   :  { %v1171_v47 = vsel %vm1168_vm10, %v1170_v2, %v1166_v57 }
0x135a   :  { %v1172_v5 = vmul.f32 %v1171_v47, %v1155_v29 }
0x135c   :  { %v1174_v12 = vsel %vm1069_vm5, %v1172_v5, %v1173_v10 }
0x135d   :  { %1176 = vst [vmem:[#allocation13 + $0x8] sm:$0xff] %v1174_v12 }
0x1397   :  { %v1458_v48 = vpop.f32.mrf.mxu3 }
0x1398   :  { %v2404_v51 = vadd.f32 %v2332_v54, %v1458_v48  ;;  %v2412_v54 = vsel %vm1069_vm5, %v1645_v56, 0.0 }
0x139a   :  { %v1461_v11 = vsel %vm1069_vm5, %v2404_v51, -1e+30 }
0x139b   :  { %1462 = vmax.xlane.f32.xlu0 %v1461_v11  ;;  %v1100_v13 = vpop.xlane.xlu0 %1099 }
0x139c   :  { %v1101_v15 = vsub.f32 %v1098_v34, %v1100_v13  ;;  %v1122_v13 = vsel %vm1070_vm9, %v2385_v1, 0.0 }
0x139e   :  { %v1102_v55 = vmul.f32 1.442695, %v1101_v15 }
0x13a0   :  { %1646 = vpow2.f32 %v1102_v55 }
0x13a1   :  { %1648 = vpow2.f32 %v1361_v52 }
0x13a2   :  { %1650 = vpow2.f32 %v1257_v61 }
0x13a3   :  { %1208 = vadd.xlane.f32.xlu0 %v2412_v54  ;;  %v1307_v59 = vpop.xlane.xlu0 %1306 }
0x13a4   :  { %v1308_v60 = vsub.f32 %v1305_v37, %v1307_v59 }
0x13a6   :  { %v1647_v62 = vpop.eup %1646  ;;  %v1309_v3 = vmul.f32 1.442695, %v1308_v60 }
0x13a7   :  { %v1649_v7 = vpop.eup %1648  ;;  %v2418_v9 = vsel %vm1069_vm5, %v1647_v62, 0.0 }
0x13a8   :  { %1652 = vpow2.f32 %v1309_v3  ;;  %1105 = vadd.xlane.f32.xlu1 %v2418_v9  ;;  %v2423_v18 = vsel %vm1069_vm5, %v1649_v7, 0.0  ;;  %v1651_v19 = vpop.eup %1650 }
0x13a9   :  { %1654 = vpow2.f32 %v1413_v16  ;;  %v2428_v24 = vsel %vm1069_vm5, %v1651_v19, 0.0 }
0x13ab   :  { %1364 = vadd.xlane.f32.xlu0 %v2423_v18 }
0x13ae   :  { %v1653_v21 = vpop.eup %1652 }
0x13af   :  { %v2432_v25 = vsel %vm1069_vm5, %v1653_v21, 0.0  ;;  %v1655_v26 = vpop.eup %1654 }
0x13b0   :  { %1260 = vadd.xlane.f32.xlu1 %v2428_v24  ;;  %1312 = vadd.xlane.f32.xlu2 %v2432_v25  ;;  %v2438_v27 = vsel %vm1069_vm5, %v1655_v26, 0.0 }
0x13b8   :  { %1416 = vadd.xlane.f32.xlu1 %v2438_v27 }
0x13bf   :  { %1060 = vrot.lane.b32.xlu0 %v2317_v50, %s1885_s10 }
0x140e   :  { %v1463_v28 = vpop.xlane.xlu0 %1462 }
0x140f   :  { %v1464_v6 = vsub.f32 %v1461_v11, %v1463_v28 }
0x1411   :  { %v1465_v29 = vmul.f32 1.442695, %v1464_v6 }
0x1413   :  { %1656 = vpow2.f32 %v1465_v29 }
0x1416   :  { %v1209_v31 = vpop.xlane.xlu0 %1208 }
0x1417   :  { %1658 = vrcp.f32 %v1209_v31  ;;  %v1221_v41 = vand.u32 2147483648, %v1209_v31  ;;  %v1219_v44 = vand.u32 2147483647, %v1209_v31  ;;  %vm1215_vm12 = vweird.f32 %v1209_v31 }
0x1419   :  { %v1657_v32 = vpop.eup %1656  ;;  %v1222_v49 = vor.u32 1.1754944e-38, %v1221_v41  ;;  %vm1220_vm14 = vcmp.eq.f32.partialorder %v1219_v44, 8.507059e+37 }
0x141a   :  { %v2444_v33 = vsel %vm1069_vm5, %v1657_v32, 0.0 }
0x141b   :  { %v1106_v34 = vpop.xlane.xlu1 %1105  ;;  %1468 = vadd.xlane.f32.xlu2 %v2444_v33 }
0x141c   :  { %1660 = vrcp.f32 %v1106_v34  ;;  %v1116_v57 = vand.u32 2147483647, %v1106_v34  ;;  %v1118_v5 = vand.u32 2147483648, %v1106_v34  ;;  %vm1112_vm0 = vweird.f32 %v1106_v34 }
0x141d   :  { %v1659_v35 = vpop.eup %1658 }
0x141e   :  { %v1211_v37 = vmul.f32 %v1659_v35, %v1209_v31  ;;  %v1365_v38 = vpop.xlane.xlu0 %1364  ;;  %vm1216_vm11 = vweird.f32 %v1659_v35  ;;  %vm1117_vm2 = vcmp.eq.f32.partialorder %v1116_v57, 8.507059e+37  ;;  %v1119_v55 = vor.u32 1.1754944e-38, %v1118_v5 }
0x141f   :  { %1662 = vrcp.f32 %v1365_v38  ;;  %vm1217_vm13 = vmor %vm1215_vm12, %vm1216_vm11  ;;  %v1375_v30 = vand.u32 2147483647, %v1365_v38  ;;  %v1377_v11 = vand.u32 2147483648, %v1365_v38  ;;  %vm1371_vm6 = vweird.f32 %v1365_v38 }
0x1420   :  { %v1212_v50 = vsub.f32 1.0, %v1211_v37  ;;  %v1381_v37 = vsel %vm1070_vm9, %v2365_v20, 0.0 }
0x1421   :  { %vm2465_vm7 = vcmp.eq.f32.partialorder %v1375_v30, 8.507059e+37  ;;  %v1378_v63 = vor.u32 1.1754944e-38, %v1377_v11 }
0x1422   :  { %v1661_v42 = vpop.eup %1660  ;;  %v1213_v43 = vmul.f32 %v1659_v35, %v1212_v50 }
0x1423   :  { %v1108_v4 = vmul.f32 %v1661_v42, %v1106_v34  ;;  %v2447_v46 = vpop.xlane.xlu1 %1260  ;;  %v2449_v40 = vpop.xlane.xlu2 %1312  ;;  %vm1113_vm15 = vweird.f32 %v1661_v42 }
0x1424   :  { %v1214_v0 = vadd.f32 %v1659_v35, %v1213_v43  ;;  %1664 = vrcp.f32 %v2447_v46  ;;  %vm1114_vm3 = vmor %vm1112_vm0, %vm1113_vm15  ;;  %v1271_v19 = vand.u32 2147483647, %v2447_v46  ;;  %v1273_v26 = vand.u32 2147483648, %v2447_v46 }
0x1425   :  { %v1663_v45 = vpop.eup %1662  ;;  %v1109_v2 = vsub.f32 1.0, %v1108_v4  ;;  %1666 = vrcp.f32 %v2449_v40  ;;  %vm1267_vm12 = vweird.f32 %v2447_v46 }
0x1426   :  { %v1218_v47 = vsel %vm1217_vm13, %v1659_v35, %v1214_v0  ;;  %v1367_v10 = vmul.f32 %v1663_v45, %v1365_v38  ;;  %vm1372_vm4 = vweird.f32 %v1663_v45  ;;  %v1323_v35 = vand.u32 2147483647, %v2449_v40 }
0x1427   :  { %v1223_v12 = vsel %vm1220_vm14, %v1222_v49, %v1218_v47  ;;  %v1110_v14 = vmul.f32 %v1661_v42, %v1109_v2  ;;  %vm1373_vm8 = vmor %vm1371_vm6, %vm1372_vm4  ;;  %vm1319_vm14 = vweird.f32 %v2449_v40  ;;  %vm1272_vm15 = vcmp.eq.f32.partialorder %v1271_v19, 8.507059e+37 }
0x1428   :  { %v1224_v48 = vmul.f32 %v1223_v12, %v2412_v54  ;;  %v1368_v8 = vsub.f32 1.0, %v1367_v10  ;;  %v1329_v47 = vsel %vm1070_vm9, %v2391_v36, 0.0 }
0x1429   :  { %v1111_v15 = vadd.f32 %v1661_v42, %v1110_v14 }
0x142a   :  { %v1665_v52 = vpop.eup %1664  ;;  %v1226_v53 = vsel %vm1069_vm5, %v1224_v48, %v1225_v22  ;;  %v1369_v56 = vmul.f32 %v1663_v45, %v1368_v8  ;;  %v1433_v48 = vsel %vm1070_vm9, %v2368_v23, 0.0 }
0x142b   :  { %v1667_v58 = vpop.eup %1666  ;;  %1228 = vst [vmem:[#allocation13 + $0x10] sm:$0xff] %v1226_v53  ;;  %v1115_v61 = vsel %vm1114_vm3, %v1661_v42, %v1111_v15  ;;  %v1263_v1 = vmul.f32 %v1665_v52, %v2447_v46  ;;  %v2470_v59 = vpop.xlane.xlu1 %1416  ;;  %vm1268_vm10 = vweird.f32 %v1665_v52  ;;  %v1274_v42 = vor.u32 1.1754944e-38, %v1273_v26 }
0x142c   :  { %v1120_v60 = vsel %vm1117_vm2, %v1119_v55, %v1115_v61  ;;  %v1370_v62 = vadd.f32 %v1663_v45, %v1369_v56  ;;  %v1315_v3 = vmul.f32 %v1667_v58, %v2449_v40  ;;  %1668 = vrcp.f32 %v2470_v59  ;;  %vm1269_vm13 = vmor %vm1267_vm12, %vm1268_vm10 }
0x142d   :  { %v1121_v7 = vmul.f32 %v1120_v60, %v2418_v9  ;;  %v1264_v16 = vsub.f32 1.0, %v1263_v1  ;;  %v1325_v9 = vand.u32 2147483648, %v2449_v40  ;;  %vm1320_vm11 = vweird.f32 %v1667_v58 }
0x142e   :  { %v1374_v21 = vsel %vm1373_vm8, %v1663_v45, %v1370_v62  ;;  %v1316_v28 = vsub.f32 1.0, %v1315_v3  ;;  %vm1321_vm0 = vmor %vm1319_vm14, %vm1320_vm11  ;;  %vm1324_vm2 = vcmp.eq.f32.partialorder %v1323_v35, 8.507059e+37  ;;  %v1277_v40 = vsel %vm1070_vm9, %v2355_v17, 0.0 }
0x142f   :  { %v1123_v6 = vsel %vm1069_vm5, %v1121_v7, %v1122_v13  ;;  %v1379_v29 = vsel %vm2465_vm7, %v1378_v63, %v1374_v21  ;;  %v1265_v31 = vmul.f32 %v1665_v52, %v1264_v16  ;;  %v1326_v20 = vor.u32 1.1754944e-38, %v1325_v9 }
0x1430   :  { %1124 = vst [vmem:[#allocation13] sm:$0xff] %v1123_v6  ;;  %v1380_v32 = vmul.f32 %v1379_v29, %v2423_v18  ;;  %v1317_v34 = vmul.f32 %v1667_v58, %v1316_v28  ;;  %v1429_v10 = vand.u32 2147483648, %v2470_v59  ;;  %v1427_v17 = vand.u32 2147483647, %v2470_v59 }
0x1431   :  { %v1266_v38 = vadd.f32 %v1665_v52, %v1265_v31  ;;  %v1061_v50 = vpop.permute.xlu0 %1060  ;;  %vm1423_vm3 = vweird.f32 %v2470_v59  ;;  %v1485_v1 = vsel %vm1070_vm9, %v2404_v51, 0.0 }
0x1432   :  { %v1382_v41 = vsel %vm1069_vm5, %v1380_v32, %v1381_v37  ;;  %v1318_v18 = vadd.f32 %v1667_v58, %v1317_v34  ;;  %1063 = vst.msk [vmem:[#allocation16] sm:$0xff] %vm159_vm1, %v1061_v50  ;;  %v1669_v43 = vpop.eup %1668  ;;  %v1430_v14 = vor.u32 1.1754944e-38, %v1429_v10  ;;  %vm1428_vm6 = vcmp.eq.f32.partialorder %v1427_v17, 8.507059e+37 }
0x1433   :  { %1384 = vst [vmem:[#allocation13 + $0x28] sm:$0xff] %v1382_v41  ;;  %v1270_v44 = vsel %vm1269_vm13, %v1665_v52, %v1266_v38  ;;  %1523 = dma.vmem_to_hbm [thread:$0]  %s1519_s14, 128, %s1521_s15, [#allocation15]   ;;  %v1419_v0 = vmul.f32 %v1669_v43, %v2470_v59  ;;  %vm1424_vm1 = vweird.f32 %v1669_v43 }
0x1434   :  { %v1275_v4 = vsel %vm1272_vm15, %v1274_v42, %v1270_v44  ;;  %v1322_v46 = vsel %vm1321_vm0, %v1667_v58, %v1318_v18  ;;  %vm1425_vm4 = vmor %vm1423_vm3, %vm1424_vm1 }
0x1435   :  { %v1276_v45 = vmul.f32 %v1275_v4, %v2428_v24  ;;  %v1327_v49 = vsel %vm1324_vm2, %v1326_v20, %v1322_v46  ;;  %v1420_v57 = vsub.f32 1.0, %v1419_v0 }
0x1436   :  { %v1328_v2 = vmul.f32 %v1327_v49, %v2432_v25 }
0x1437   :  { %v1278_v5 = vsel %vm1069_vm5, %v1276_v45, %v1277_v40  ;;  %v1421_v12 = vmul.f32 %v1669_v43, %v1420_v57 }
0x1438   :  { %1280 = vst [vmem:[#allocation13 + $0x18] sm:$0xff] %v1278_v5  ;;  %v1330_v24 = vsel %vm1069_vm5, %v1328_v2, %v1329_v47 }
0x1439   :  { %1332 = vst [vmem:[#allocation13 + $0x20] sm:$0xff] %v1330_v24  ;;  %v1422_v25 = vadd.f32 %v1669_v43, %v1421_v12 }
0x143b   :  { %v1426_v36 = vsel %vm1425_vm4, %v1669_v43, %v1422_v25 }
0x143c   :  { %v1431_v30 = vsel %vm1428_vm6, %v1430_v14, %v1426_v36 }
0x143d   :  { %v1432_v22 = vmul.f32 %v1431_v30, %v2438_v27 }
0x143f   :  { %v1434_v8 = vsel %vm1069_vm5, %v1432_v22, %v1433_v48 }
0x1440   :  { %1436 = vst [vmem:[#allocation13 + $0x30] sm:$0xff] %v1434_v8 }
0x148e   :  { %v1469_v11 = vpop.xlane.xlu2 %1468 }
0x148f   :  { %1670 = vrcp.f32 %v1469_v11  ;;  %v1481_v53 = vand.u32 2147483648, %v1469_v11  ;;  %v1479_v56 = vand.u32 2147483647, %v1469_v11  ;;  %vm1475_vm8 = vweird.f32 %v1469_v11 }
0x1491   :  { %v1482_v27 = vor.u32 1.1754944e-38, %v1481_v53  ;;  %vm1480_vm11 = vcmp.eq.f32.partialorder %v1479_v56, 8.507059e+37 }
0x1495   :  { %v1671_v13 = vpop.eup %1670 }
0x1496   :  { %v1471_v15 = vmul.f32 %v1671_v13, %v1469_v11  ;;  %vm1476_vm7 = vweird.f32 %v1671_v13 }
0x1497   :  { %vm1477_vm10 = vmor %vm1475_vm8, %vm1476_vm7 }
0x1498   :  { %v1472_v52 = vsub.f32 1.0, %v1471_v15 }
0x149a   :  { %v1473_v55 = vmul.f32 %v1671_v13, %v1472_v52 }
0x149c   :  { %v1474_v58 = vadd.f32 %v1671_v13, %v1473_v55 }
0x149e   :  { %v1478_v61 = vsel %vm1477_vm10, %v1671_v13, %v1474_v58 }
0x149f   :  { %v1483_v23 = vsel %vm1480_vm11, %v1482_v27, %v1478_v61 }
0x14a0   :  { %v1484_v54 = vmul.f32 %v1483_v23, %v2444_v33 }
0x14a2   :  { %v1486_v59 = vsel %vm1069_vm5, %v1484_v54, %v1485_v1 }
0x14a3   :  { %1488 = vst [vmem:[#allocation13 + $0x38] sm:$0xff] %v1486_v59 }
0x14a4   :  { %1501 = dma.vmem_to_hbm [thread:$0]  %s1494_s18, 1024, %s1496_s4, [#allocation6], %s1875_s16, %s1875_s16, %s1876_s17  }
0x14a5   :  { %1870 = dma.done.wait [#allocation6], 1024  }
0x14a6   :  { %1871 = vsyncadd [#allocation6], 4294966272 }
0x14a7   :  { %1872 = dma.done.wait [#allocation15], 256  }
0x14a8   :  { %1873 = vsyncadd [#allocation15], 4294967040 }
0x14a9   :  { %1536 = vsyncpa [#allocation5], 1 }
0x14aa   :  { %1537 = vsyncpa [#allocation8], 1 }
0x14ab   :  { %1538 = vsyncpa [#allocation11], 1 }
0x14ac   :  { %1539 = vsyncpa [#allocation6], 1 }
0x14ad   :  { %1540 = vsyncpa [#allocation15], 1 }

</bundles_post_ra>
